<compile_context>
chip_gen: v7x
topology: tpu7x:2x2x1
jax: 0.10.0
libtpu: 0.0.40
codegen_flags: <defaults>
</compile_context>

<pallas_src>
import jax
import jax.numpy as jnp
from jax.experimental import pallas as pl
from jax.experimental.pallas import tpu as pltpu

BN_EPS = 1e-5  # nn.BatchNorm1d default eps


def disentangle_eval_kernel(x_ref, w_ref, p_ref, out1_ref, out2_ref):
    # x_ref: (TB, HW, Cin) bf16   w_ref: (Cin, C) bf16   p_ref: (8, C) f32
    TB, HW, Cin = x_ref.shape
    C = w_ref.shape[1]

    # 1x1 conv (trunk surrogate): one big MXU matmul over the whole TB*HW slab,
    # bf16 operands, f32 accumulation.
    x = x_ref[...].reshape(TB * HW, Cin)
    feat = jnp.dot(x, w_ref[...], preferred_element_type=jnp.float32)  # (TB*HW, C)
    feat = feat.reshape(TB, HW, C)

    # Global avg + max pools over the spatial axis.
    # NOTE: correct only because HW exactly matches the block (no spatial padding);
    # if HW were ever padded, max needs -inf masking and mean the true HW.
    x_a = jnp.sum(feat, axis=1) * (1.0 / HW)        # (TB, C)
    x_m = jnp.max(feat, axis=1)                     # (TB, C)

    p = p_ref[...]                                  # (8, C) f32
    bias = p[0:1]                                   # (1, C) conv bias
    bn_scale = p[1:2]                               # gamma * rsqrt(var + eps)
    bn_shift = p[2:3]                               # beta - mean * scale

    # Conv bias folded outside the pools: x_c = avg(f)+max(f)+2*b.
    x_c = x_a + x_m + 2.0 * bias                    # (TB, C)

    # Normalize(2): x * rsqrt(sum(x^2))  (rsqrt on EUP, mul on VPU)
    inv1 = jax.lax.rsqrt(jnp.sum(x_c * x_c, axis=-1, keepdims=True))
    out1_ref[...] = x_c * inv1

    # W1.BN (eval) pre-folded into affine, then l2norm.
    bn = x_c * bn_scale + bn_shift
    inv2 = jax.lax.rsqrt(jnp.sum(bn * bn, axis=-1, keepdims=True))
    out2_ref[...] = bn * inv2


def disentangle_forward_eval(x1_nchw, x2_nchw, params):
    """Eval-mode Disentangle_net.forward with modal=0 (concat visible+thermal)."""
    x = jnp.concatenate([x1_nchw, x2_nchw], axis=0)            # (B, Cin, H, W)
    B, Cin, H, W = x.shape
    HW = H * W
    # Channels-last so Cin / C map to TPU lanes; bf16 for the MXU operands.
    x = jnp.transpose(x, (0, 2, 3, 1)).reshape(B, HW, Cin).astype(jnp.bfloat16)

    w = params["proj_w"].astype(jnp.bfloat16)                  # (Cin, C)
    C = w.shape[1]

    # Pre-fold conv bias + eval BatchNorm1d affine into one aligned (8, C) tile.
    bn_scale = params["bn_gamma"] * jax.lax.rsqrt(params["bn_var"] + BN_EPS)
    bn_shift = params["bn_beta"] - params["bn_mean"] * bn_scale
    pmat = jnp.zeros((8, C), jnp.float32)
    pmat = pmat.at[0].set(params["proj_b"][0])
    pmat = pmat.at[1].set(bn_scale[0])
    pmat = pmat.at[2].set(bn_shift[0])

    # 8 images per grid step (aligned (8, C) output stores); fall back to the
    # full batch in one step if B is not a multiple of 8 (block == full dim).
    TB = 8 if B % 8 == 0 else B
    grid = (B // TB,)

    out_spec = pl.BlockSpec((TB, C), lambda b: (b, 0))
    return pl.pallas_call(
        disentangle_eval_kernel,
        out_shape=(jax.ShapeDtypeStruct((B, C), jnp.float32),
                   jax.ShapeDtypeStruct((B, C), jnp.float32)),
        grid_spec=pltpu.PrefetchScalarGridSpec(
            num_scalar_prefetch=0,
            grid=grid,
            in_specs=[
                pl.BlockSpec((TB, HW, Cin), lambda b: (b, 0, 0)),  # feature maps
                pl.BlockSpec((Cin, C), lambda b: (0, 0)),          # conv1x1 weight
                pl.BlockSpec((8, C), lambda b: (0, 0)),            # packed params
            ],
            out_specs=[out_spec, out_spec],
        ),
        compiler_params=pltpu.CompilerParams(
            dimension_semantics=("parallel",),
            vmem_limit_bytes=48 * 1024 * 1024,
        ),
    )(x, w, pmat)


def make_params(cin, pool_dim):
    """Deterministic synthetic parameters (no checkpoint load)."""
    k = jax.random.PRNGKey(0)
    kw, kb, kg = jax.random.split(k, 3)
    return {
        # Encoder.proj surrogate: Conv2d(Cin, pool_dim, kernel_size=1)
        "proj_w": jax.random.normal(kw, (cin, pool_dim), jnp.float32) * 0.05,
        "proj_b": jax.random.normal(kb, (1, pool_dim), jnp.float32) * 0.01,
        # W1.BN: weights_init_kaiming -> gamma ~ N(1, 0.01), beta frozen at 0,
        # fresh running stats (mean=0, var=1).
        "bn_gamma": 1.0 + 0.01 * jax.random.normal(kg, (1, pool_dim), jnp.float32),
        "bn_beta": jnp.zeros((1, pool_dim), jnp.float32),
        "bn_mean": jnp.zeros((1, pool_dim), jnp.float32),
        "bn_var": jnp.ones((1, pool_dim), jnp.float32),
    }


def _reference(x1, x2, params):
    """Plain-JAX f32 reference for a correctness sanity check."""
    x = jnp.concatenate([x1, x2], axis=0)
    B, Cin, H, W = x.shape
    xf = jnp.transpose(x, (0, 2, 3, 1)).reshape(B, H * W, Cin)
    feat = jnp.einsum("bsc,cd->bsd", xf, params["proj_w"]) + params["proj_b"][0]
    x_a = feat.mean(axis=1)
    x_m = feat.max(axis=1)
    x_c = x_a + x_m
    o1 = x_c / jnp.sqrt(jnp.sum(x_c * x_c, -1, keepdims=True))
    bn = (x_c - params["bn_mean"][0]) / jnp.sqrt(params["bn_var"][0] + BN_EPS) \
         * params["bn_gamma"][0] + params["bn_beta"][0]
    o2 = bn / jnp.sqrt(jnp.sum(bn * bn, -1, keepdims=True))
    return o1, o2


if __name__ == "__main__":
    # 8 visible + 8 thermal images -> B=16 -> 2 parallel grid steps of 8 images.
    # Cin=64, 8x8 spatial, pool_dim reduced 2048 -> 256 for the synthetic test.
    B_PER_MODAL, CIN, H, W = 8, 64, 8, 8
    POOL_DIM = 256

    key = jax.random.PRNGKey(0)
    k1, k2 = jax.random.split(key)
    x1 = jax.random.normal(k1, (B_PER_MODAL, CIN, H, W), jnp.float32)  # visible NCHW
    x2 = jax.random.normal(k2, (B_PER_MODAL, CIN, H, W), jnp.float32)  # thermal NCHW

    params = make_params(CIN, POOL_DIM)

    out1, out2 = disentangle_forward_eval(x1, x2, params)
    jax.block_until_ready((out1, out2))

    r1, r2 = _reference(x1, x2, params)
    # Relaxed tolerance: MXU operands are bf16 (f32 accumulation).
    assert jnp.allclose(out1, r1, atol=1e-2, rtol=1e-2)
    assert jnp.allclose(out2, r2, atol=1e-2, rtol=1e-2)

    print("KERNEL_OK")
</pallas_src>

<mosaic_0001>
module attributes {stable_mosaic.version = 11 : i64} {
  func.func @disentangle_eval_kernel(%arg0: i32, %arg1: memref<8x64x64xbf16, #tpu.memory_space<vmem>>, %arg2: memref<64x256xbf16, #tpu.memory_space<vmem>>, %arg3: memref<8x256xf32, #tpu.memory_space<vmem>>, %arg4: memref<8x256xf32, #tpu.memory_space<vmem>>, %arg5: memref<8x256xf32, #tpu.memory_space<vmem>>) attributes {dimension_semantics = [#tpu.dimension_semantics<parallel>], iteration_bounds = array<i64: 2>, scalar_prefetch = 0 : i64, scratch_operands = 0 : i64, tpu.core_type = #tpu.core_type<tc>, window_params = [{transform_indices = @transform_0, window_bounds = array<i64: 8, 64, 64>}, {pipeline_mode = #tpu.pipeline_mode<synchronous>, transform_indices = @transform_1, window_bounds = array<i64: 64, 256>}, {pipeline_mode = #tpu.pipeline_mode<synchronous>, transform_indices = @transform_2, window_bounds = array<i64: 8, 256>}, {transform_indices = @transform_3, window_bounds = array<i64: 8, 256>}, {transform_indices = @transform_4, window_bounds = array<i64: 8, 256>}]} {
    %c0 = arith.constant 0 : index
    %c0_0 = arith.constant 0 : index
    %c0_1 = arith.constant 0 : index
    %0 = vector.load %arg1[%c0, %c0_0, %c0_1] : memref<8x64x64xbf16, #tpu.memory_space<vmem>>, vector<8x64x64xbf16>
    %1 = vector.shape_cast %0 : vector<8x64x64xbf16> to vector<512x64xbf16>
    %c0_2 = arith.constant 0 : index
    %c0_3 = arith.constant 0 : index
    %2 = vector.load %arg2[%c0_2, %c0_3] : memref<64x256xbf16, #tpu.memory_space<vmem>>, vector<64x256xbf16>
    %cst = arith.constant dense<0.000000e+00> : vector<512x256xf32>
    %3 = tpu.matmul %1, %2, %cst {dimension_numbers = #tpu.dot_dimension_numbers<[1], [0], [0], [1], [0, 0, 1, 1], [], []>} : vector<512x64xbf16>, vector<64x256xbf16>, vector<512x256xf32> -> vector<512x256xf32>
    %4 = vector.shape_cast %3 : vector<512x256xf32> to vector<8x64x256xf32>
    %cst_4 = arith.constant dense<0.000000e+00> : vector<8x256xf32>
    %5 = vector.multi_reduction <add>, %4, %cst_4 [1] : vector<8x64x256xf32> to vector<8x256xf32>
    %cst_5 = arith.constant 1.562500e-02 : f32
    %6 = vector.broadcast %cst_5 : f32 to vector<8x256xf32>
    %7 = arith.mulf %5, %6 : vector<8x256xf32>
    %cst_6 = arith.constant dense<0xFF800000> : vector<8x256xf32>
    %8 = vector.multi_reduction <maximumf>, %4, %cst_6 [1] : vector<8x64x256xf32> to vector<8x256xf32>
    %c0_7 = arith.constant 0 : index
    %c0_8 = arith.constant 0 : index
    %9 = vector.load %arg3[%c0_7, %c0_8] : memref<8x256xf32, #tpu.memory_space<vmem>>, vector<8x256xf32>
    %10 = vector.extract_strided_slice %9 {offsets = [0, 0], sizes = [1, 256], strides = [1, 1]} : vector<8x256xf32> to vector<1x256xf32>
    %11 = vector.extract_strided_slice %9 {offsets = [1, 0], sizes = [1, 256], strides = [1, 1]} : vector<8x256xf32> to vector<1x256xf32>
    %12 = vector.extract_strided_slice %9 {offsets = [2, 0], sizes = [1, 256], strides = [1, 1]} : vector<8x256xf32> to vector<1x256xf32>
    %13 = arith.addf %7, %8 : vector<8x256xf32>
    %cst_9 = arith.constant 2.000000e+00 : f32
    %14 = vector.broadcast %cst_9 : f32 to vector<1x256xf32>
    %15 = arith.mulf %14, %10 : vector<1x256xf32>
    %16 = vector.broadcast %15 : vector<1x256xf32> to vector<8x256xf32>
    %17 = arith.addf %13, %16 : vector<8x256xf32>
    %18 = arith.mulf %17, %17 : vector<8x256xf32>
    %cst_10 = arith.constant dense<0.000000e+00> : vector<8xf32>
    %19 = vector.multi_reduction <add>, %18, %cst_10 [1] : vector<8x256xf32> to vector<8xf32>
    %20 = vector.shape_cast %19 : vector<8xf32> to vector<8x1xf32>
    %21 = math.rsqrt %20 : vector<8x1xf32>
    %22 = vector.broadcast %21 : vector<8x1xf32> to vector<8x256xf32>
    %23 = arith.mulf %17, %22 : vector<8x256xf32>
    %c0_11 = arith.constant 0 : index
    %c0_12 = arith.constant 0 : index
    %24 = vector.load %arg4[%c0_11, %c0_12] : memref<8x256xf32, #tpu.memory_space<vmem>>, vector<8x256xf32>
    tpu.vector_store %arg4[%c0_11, %c0_12], %23 {strides = array<i32>} : memref<8x256xf32, #tpu.memory_space<vmem>>, vector<8x256xf32>,
    %25 = vector.broadcast %11 : vector<1x256xf32> to vector<8x256xf32>
    %26 = arith.mulf %17, %25 : vector<8x256xf32>
    %27 = vector.broadcast %12 : vector<1x256xf32> to vector<8x256xf32>
    %28 = arith.addf %26, %27 : vector<8x256xf32>
    %29 = arith.mulf %28, %28 : vector<8x256xf32>
    %cst_13 = arith.constant dense<0.000000e+00> : vector<8xf32>
    %30 = vector.multi_reduction <add>, %29, %cst_13 [1] : vector<8x256xf32> to vector<8xf32>
    %31 = vector.shape_cast %30 : vector<8xf32> to vector<8x1xf32>
    %32 = math.rsqrt %31 : vector<8x1xf32>
    %33 = vector.broadcast %32 : vector<8x1xf32> to vector<8x256xf32>
    %34 = arith.mulf %28, %33 : vector<8x256xf32>
    %c0_14 = arith.constant 0 : index
    %c0_15 = arith.constant 0 : index
    %35 = vector.load %arg5[%c0_14, %c0_15] : memref<8x256xf32, #tpu.memory_space<vmem>>, vector<8x256xf32>
    tpu.vector_store %arg5[%c0_14, %c0_15], %34 {strides = array<i32>} : memref<8x256xf32, #tpu.memory_space<vmem>>, vector<8x256xf32>,
    return
  }
  func.func @transform_0(%arg0: i32) -> (i32, i32, i32) {
    %c0_i32 = arith.constant 0 : i32
    %c0_i32_0 = arith.constant 0 : i32
    %c0_i32_1 = arith.constant 0 : i32
    return %arg0, %c0_i32, %c0_i32_0 : i32, i32, i32
  }
  func.func @transform_1(%arg0: i32) -> (i32, i32) {
    %c0_i32 = arith.constant 0 : i32
    %c0_i32_0 = arith.constant 0 : i32
    %c0_i32_1 = arith.constant 0 : i32
    return %c0_i32, %c0_i32_0 : i32, i32
  }
  func.func @transform_2(%arg0: i32) -> (i32, i32) {
    %c0_i32 = arith.constant 0 : i32
    %c0_i32_0 = arith.constant 0 : i32
    %c0_i32_1 = arith.constant 0 : i32
    return %c0_i32, %c0_i32_0 : i32, i32
  }
  func.func @transform_3(%arg0: i32) -> (i32, i32) {
    %c0_i32 = arith.constant 0 : i32
    %c0_i32_0 = arith.constant 0 : i32
    return %arg0, %c0_i32 : i32, i32
  }
  func.func @transform_4(%arg0: i32) -> (i32, i32) {
    %c0_i32 = arith.constant 0 : i32
    %c0_i32_0 = arith.constant 0 : i32
    return %arg0, %c0_i32 : i32, i32
  }
}

</mosaic_0001>

<bundles_post_ra>
// kernel: tpu_custom_call.1
= control target key start
LH: loop header
LB: loop body
LE: loop exit
PB: predicated region body
PF: predicated region fallthrough
CT: control target
= control target key end

     0   :  { %10 = vsyncpa [#allocation3], 0  ;;  %s3218_s0 = inlined_call_operand.hbm [shape: bf16[16,64,64], index: 0, kind: input, shape index: {}]   ;;  %s3219_s1 = inlined_call_operand.hbm [shape: bf16[64,256], index: 1, kind: input, shape index: {}]   ;;  %s3220_s2 = inlined_call_operand.hbm [shape: f32[8,256], index: 2, kind: input, shape index: {}]   ;;  %s3221_s3 = inlined_call_operand.hbm [shape: f32[16,256], index: 3, kind: output, shape index: {0}]   ;;  %s3222_s4 = inlined_call_operand.hbm [shape: f32[16,256], index: 4, kind: output, shape index: {1}]  }
   0x1   :  { %12 = vsyncpa [#allocation3 + $0x1], 0 }
   0x2   :  { %13 = vsyncpa [#allocation6], 0 }
   0x3   :  { %14 = vsyncpa [#allocation4], 0 }
   0x4   :  { %16 = vsyncpa [#allocation4 + $0x1], 0 }
   0x5   :  { %17 = vsyncpa [#allocation10], 0 }
   0x6   :  { %19 = vsyncpa [#allocation10 + $0x1], 0  ;;  %s2414_s15 = smov 0   ;;  %s2416_s16 = smov 0  }
   0x7   :  { %s2418_s17 = smov 0   ;;  %s2420_s18 = smov 0  }
   0x8 LB: > { %s2435_s19 = sadd.s32 4294967295, %s2377_s18   ;;  %s1957_s20 = sadd.s32 4294967294, %s2377_s18   ;;  %s2377_s18 = sphi %s2420_s18, %s3277_s18   ;;  %s2373_s17 = sphi %s2418_s17, %s3276_s17   ;;  %s2369_s16 = sphi %s2416_s16, %s3275_s16   ;;  %s2365_s15 = sphi %s2414_s15, %s3274_s15  }
   0x9   : > { %p45_p0 = scmp.ne.s32.totalorder %s2369_s16, %s2365_s15  ;;  %p3223_p1 = scmp.eq.s32.totalorder %s2435_s19, 0 }
   0xa   : > { %p117_p3 = scmp.eq.s32.totalorder %s1957_s20, 1  ;;  %p1958_p5 = scmp.ge.s32.totalorder %s2377_s18, 1 }
   0xb   : > { %p2444_p4 = por %p3223_p1, %p45_p0  ;;  %p150_p7 = scmp.lt.s32.totalorder %s2377_s18, 3 }
   0xc   : > { %p2449_p6 = por %p117_p3, %p45_p0  ;;  %s2379_s24 = smov [#allocation5]  }
   0xd   : > { %s3237_s21 = scalar_select %p2444_p4, 1, 0 }
   0xe   : > { %s3238_s22 = scalar_select %p2449_p6, 1, 0 }
   0xf   : > { %p2454_p8 = pnand %p1958_p5, %p150_p7  ;;  %s162_s25 = sshll.u32 %s2379_s24, 4  ;;  %s2458_s25 = int_to_ptr.vmem [resolvable:$true] %s162_s25 }
  0x10   : > { %s2380_s27 = smov [#allocation7]   ;;  %s2189_s5 = scalar_lea.hbm %s3219_s1, 1024 }
  0x11   : > { %p2078_p9 = pneg %p2454_p8  ;;  %s176_s28 = sshll.u32 %s2380_s27, 4  ;;  %s2469_s28 = int_to_ptr.vmem [resolvable:$true] %s176_s28 }
  0x12   : > { %p2190_p12 = scmp.ne.s32.totalorder %s3219_s1, %s2189_s5  ;;  %p2196_p5 = scmp.lt.u32.totalorder %s2189_s5, %s3219_s1 }
  0x13   : > { %p2465_p11 = pnand %p2078_p9, %p3223_p1 }
  0x15   : > { %p2191_p13 = pneg %p2465_p11 }
  0x17   : > { %p2192_p0 = pnand %p2191_p13, %p2190_p12 }
  0x19   : > { %p2193_p3 = pneg %p2192_p0 }
  0x1b   : > { %p2198_p7 = pnand %p2196_p5, %p2193_p3 }
  0x1d   : > { %2201 = shalt.err (!%p2198_p7)
}
  0x1e   : > { %s2202_s10 = scalar_lea.vmem %s2458_s25, 1024  ;;  %p2210_p2 = scmp.lt.s32.totalorder %s2458_s25, %s2458_s25 }
  0x1f   : > { %p2203_p9 = scmp.ne.s32.totalorder %s2458_s25, %s2202_s10  ;;  %p2211_p12 = scmp.lt.s32.totalorder %s2202_s10, %s2202_s10 }
  0x21   : > { %p2205_p10 = pnand %p2203_p9, %p2191_p13  ;;  %p2212_p0 = por %p2211_p12, %p2210_p2 }
  0x23   : > { %p2206_p1 = pneg %p2205_p10 }
  0x25   : > { %p2213_p6 = pnand %p2212_p0, %p2206_p1 }
  0x27   : > { %2216 = shalt.err (!%p2213_p6)
}
  0x28   : > { %s2381_s11 = smov 128   ;;  %s2382_s12 = smov 8  }
  0x29   : > { %2081 = dma.hbm_to_vmem [thread:$0]  (!%p2465_p11), %s3219_s1, 1024, %s2458_s25, [#allocation6], %s2381_s11, %s2381_s11, %s2382_s12  }
  0x2a   : > { %s2217_s27 = scalar_lea.hbm %s3220_s2, 256 }
  0x2b   : > { %p2218_p2 = scmp.ne.s32.totalorder %s3220_s2, %s2217_s27  ;;  %p2224_p10 = scmp.lt.u32.totalorder %s2217_s27, %s3220_s2 }
  0x2d   : > { %p2220_p1 = pnand %p2218_p2, %p2191_p13 }
  0x2f   : > { %p2221_p6 = pneg %p2220_p1 }
  0x31   : > { %p2226_p3 = pnand %p2224_p10, %p2221_p6 }
  0x33   : > { %2229 = shalt.err (!%p2226_p3)
}
  0x34   : > { %s2230_s25 = scalar_lea.vmem %s2469_s28, 256  ;;  %p2238_p12 = scmp.lt.s32.totalorder %s2469_s28, %s2469_s28 }
  0x35   : > { %p2231_p5 = scmp.ne.s32.totalorder %s2469_s28, %s2230_s25  ;;  %p2239_p0 = scmp.lt.s32.totalorder %s2230_s25, %s2230_s25 }
  0x37   : > { %p2233_p7 = pnand %p2231_p5, %p2191_p13  ;;  %p2240_p2 = por %p2239_p0, %p2238_p12 }
  0x39   : > { %p2234_p9 = pneg %p2233_p7 }
  0x3b   : > { %p2241_p1 = pnand %p2240_p2, %p2234_p9 }
  0x3d   : > { %2244 = shalt.err (!%p2241_p1)
}
  0x3e   : > { %2084 = dma.hbm_to_vmem [thread:$0]  (!%p2465_p11), %s3220_s2, 256, %s2469_s28, [#allocation6]  }
  0x3f   : > { %s2524_s9 = sadd.s32 1, %s2377_s18   ;;  %s32_s26 = sadd.s32 1, %s2373_s17 }
  0x40   : > { %s29_s10 = ssub.s32 %s2377_s18, %s2524_s9  ;;  %p39_p13 = scmp.ne.s32.totalorder %s2373_s17, %s2369_s16 }
  0x41   : > { %p30_p6 = scmp.eq.s32.totalorder %s29_s10, 0  ;;  %p40_p10 = scmp.eq.s32.totalorder %s2377_s18, 0 }
  0x42   : > { %p3241_p3 = scmp.eq.s32.totalorder %s2435_s19, 1  ;;  %p2098_p7 = scmp.lt.s32.totalorder %s2377_s18, 2 }
  0x43   : > { %s2540_s12 = scalar_select %p30_p6, %s2373_s17, %s32_s26  }
  0x44   : > { %p2534_p5 = por %p3241_p3, %p39_p13  ;;  %p41_p9 = por %p40_p10, %p39_p13 }
  0x45   : > { %s187_s13 = sand.u32 1, %s2373_s17   ;;  %s2053_s28 = sshll.u32 %s2377_s18, 12 }
  0x46   : > { %s3242_s11 = scalar_select %p2534_p5, 1, 0 }
  0x47   : > { %s1962_s14 = sshll.u32 %s187_s13, 8  ;;  %s2547_s27 = scalar_lea.hbm %s3218_s0, %s2053_s28 }
  0x48   : > { %s191_s29 = scalar_lea.vmem [#allocation2], %s1962_s14  ;;  %p2551_p11 = pnand %p2098_p7, %p41_p9 }
  0x49   : > { %s199_s30 = sshll.u32 %s191_s29, 4  ;;  %s2555_s6 = scalar_lea.sflag [#allocation3], %s187_s13  ;;  %s2549_s30 = int_to_ptr.vmem [resolvable:$true] %s199_s30 }
  0x4a   : > { %s2245_s25 = scalar_lea.hbm %s2547_s27, 4096  ;;  %p2247_p0 = pneg %p2551_p11 }
  0x4b   : > { %p2246_p12 = scmp.ne.s32.totalorder %s2547_s27, %s2245_s25  ;;  %s2250_s26 = scalar_lea.hbm %s3218_s0, 8192 }
  0x4c   : > { %p2251_p13 = scmp.lt.u32.totalorder %s2547_s27, %s3218_s0  ;;  %p2252_p6 = scmp.lt.u32.totalorder %s2250_s26, %s2245_s25 }
  0x4d   : > { %p2248_p2 = pnand %p2247_p0, %p2246_p12  ;;  %p2254_p3 = scmp.lt.u32.totalorder %s2245_s25, %s2547_s27 }
  0x4e   : > { %p2253_p10 = por %p2252_p6, %p2251_p13 }
  0x4f   : > { %p2249_p1 = pneg %p2248_p2 }
  0x50   : > { %p2255_p7 = por %p2254_p3, %p2253_p10 }
  0x52   : > { %p2256_p9 = pnand %p2255_p7, %p2249_p1 }
  0x54   : > { %2259 = shalt.err (!%p2256_p9)
}
  0x55   : > { %s2260_s13 = scalar_lea.vmem %s2549_s30, 4096  ;;  %s2383_s28 = smov [#allocation2]  }
  0x56   : > { %p2261_p12 = scmp.ne.s32.totalorder %s2549_s30, %s2260_s13  ;;  %s2265_s20 = sshll.u32 %s2383_s28, 4  ;;  %s2266_s20 = int_to_ptr.vmem [resolvable:$false] %s2265_s20 }
  0x57   : > { %s2267_s24 = scalar_lea.vmem %s2266_s20, 8192  ;;  %p2268_p4 = scmp.lt.s32.totalorder %s2549_s30, %s2266_s20 }
  0x58   : > { %p2263_p2 = pnand %p2261_p12, %p2247_p0  ;;  %p2269_p13 = scmp.lt.s32.totalorder %s2267_s24, %s2260_s13 }
  0x5a   : > { %p2264_p5 = pneg %p2263_p2  ;;  %p2270_p6 = por %p2269_p13, %p2268_p4 }
  0x5c   : > { %p2271_p10 = pnand %p2270_p6, %p2264_p5 }
  0x5e   : > { %2274 = shalt.err (!%p2271_p10)
}
  0x5f   : > { %s2384_s29 = smov 64   ;;  %s2385_s25 = smov 4  }
  0x60   : > { %2088 = dma.hbm_to_vmem [thread:$0]  (!%p2551_p11), %s2547_s27, 4096, %s2549_s30, %s2555_s6, %s2384_s29, %s2384_s29, %s2385_s25  }
  0x61   : > { %211 = sbr.rel (%p2454_p8) target bundleno = 704 (0x2c0), region = 32 }
  0x68   : > { %s2586_s7 = sand.u32 1, %s2369_s16   ;;  %p3244_p4 = scmp.ne.s32.totalorder %s3237_s21, 0 }
  0x69   : > { %s1967_s8 = sshll.u32 %s2586_s7, 8  ;;  %s214_s26 = scalar_lea.sflag [#allocation3], %s2586_s7 }
  0x6a   : > { %s2590_s10 = scalar_lea.vmem [#allocation2], %s1967_s8 }
  0x6b   : > { %2348 = dma.done.wait (%p3244_p4), %s214_s26, 4096  }
  0x6c   : > { %2350 = vsyncadd (%p3244_p4), %s214_s26, 4294963200  ;;  %p3245_p5 = scmp.eq.s32.totalorder %s2435_s19, 0 }
  0x6e   : > { %2352 = dma.done.wait (%p3245_p5), [#allocation6], 1280   ;;  %p3246_p8 = pmov %p3245_p5 }
  0x6f   : > { %v2386_v0 = vmov 0   ;;  %v2141_v1 = vld [vmem:[#allocation5 + $0x4] ss:$8 sps:$4 sm:$0xff]   ;;  %v2143_v2 = vld [vmem:[#allocation5] ss:$8 sps:$4 sm:$0xff]   ;;  %vm529_vm0 = vcmask 523264   ;;  %v1431_v47 = vlaneseq }
  0x70   : > { %2354 = vsyncadd (%p3246_p8), [#allocation6], 4294966016  ;;  %658 = vmatprep.mubr.bf16.mxu0 %v2386_v0  ;;  %818 = vmatprep.mubr.bf16.mxu1 %v2386_v0  ;;  %v2144_v3 = vld [vmem:[#allocation5 + $0x14] ss:$8 sps:$4 sm:$0xff]   ;;  %v2146_v4 = vld [vmem:[#allocation5 + $0x10] ss:$8 sps:$4 sm:$0xff]  }
  0x71   : > { %626 = vmatprep.subr.bf16.mxu0 %v2141_v1  ;;  %2056 = vmatprep.subr.bf16.mxu1 %v2141_v1  ;;  %v2147_v5 = vld [vmem:[#allocation5 + $0x24] ss:$8 sps:$4 sm:$0xff]   ;;  %v2149_v6 = vld [vmem:[#allocation5 + $0x20] ss:$8 sps:$4 sm:$0xff]   ;;  %v2150_v7 = vld [vmem:[#allocation5 + $0x34] ss:$8 sps:$4 sm:$0xff]  }
  0x72   : > { %627 = vmatpush1.bf16.msra.mxu0 %v2143_v2  ;;  %2060 = vmatpush1.bf16.msra.mxu1 %v2143_v2  ;;  %v2152_v8 = vld [vmem:[#allocation5 + $0x30] ss:$8 sps:$4 sm:$0xff]   ;;  %v2153_v9 = vld [vmem:[%s2590_s10] sm:$0xff]   ;;  %v2155_v11 = vld [vmem:[%s2590_s10 + $0x8] sm:$0xff]   ;;  %v2696_v60 = vshrl.u32 %v1431_v47, 7  ;;  %vm1488_vm1 = vcmask 1041409  }
  0x73   : > { %628 = vmatprep.subr.bf16.mxu0 %v2144_v3  ;;  %2057 = vmatprep.subr.bf16.mxu1 %v2144_v3  ;;  %v2154_v10 = vld [vmem:[%s2590_s10 + $0x80] sm:$0xff]   ;;  %v2156_v12 = vld [vmem:[%s2590_s10 + $0x88] sm:$0xff]   ;;  %v2157_v13 = vld [vmem:[%s2590_s10 + $0x10] sm:$0xff]   ;;  %vm1491_vm2 = vcmask 1042434   ;;  %vm1494_vm3 = vcmask 1043459   ;;  %vm1497_vm4 = vcmask 1044484  }
  0x74   : > { %v2158_v14 = vld [vmem:[%s2590_s10 + $0x90] sm:$0xff]   ;;  %v2159_v15 = vld [vmem:[%s2590_s10 + $0x18] sm:$0xff]   ;;  %v2161_v17 = vld [vmem:[%s2590_s10 + $0x20] sm:$0xff]   ;;  %vm1500_vm5 = vcmask 1045509   ;;  %vm1503_vm6 = vcmask 1046534   ;;  %vm1506_vm7 = vcmask 1047559  }
  0x75   : > { %v2160_v16 = vld [vmem:[%s2590_s10 + $0x98] sm:$0xff]   ;;  %v2162_v18 = vld [vmem:[%s2590_s10 + $0xa0] sm:$0xff]   ;;  %v2163_v19 = vld [vmem:[%s2590_s10 + $0x28] sm:$0xff]   ;;  %s1970_s21 = sshll.u32 %s2586_s7, 4  ;;  %s2054_s23 = sshll.u32 %s2435_s19, 8 }
  0x76   : > { %629 = vmatpush1.bf16.msra.mxu0 %v2146_v4  ;;  %2061 = vmatpush1.bf16.msra.mxu1 %v2146_v4  ;;  %v2164_v20 = vld [vmem:[%s2590_s10 + $0xa8] sm:$0xff]   ;;  %v2165_v21 = vld [vmem:[%s2590_s10 + $0x30] sm:$0xff]   ;;  %v2167_v23 = vld [vmem:[%s2590_s10 + $0x38] sm:$0xff]   ;;  %s247_s27 = scalar_lea.vmem [#allocation8], %s1970_s21  ;;  %s3104_s14 = scalar_lea.hbm %s3221_s3, %s2054_s23 }
  0x77   : > { %630 = vmatprep.subr.bf16.mxu0 %v2147_v5  ;;  %2058 = vmatprep.subr.bf16.mxu1 %v2147_v5  ;;  %v2166_v22 = vld [vmem:[%s2590_s10 + $0xb0] sm:$0xff]   ;;  %v2168_v24 = vld [vmem:[%s2590_s10 + $0xb8] sm:$0xff]   ;;  %v2169_v25 = vld [vmem:[%s2590_s10 + $0x40] sm:$0xff]   ;;  %s1822_s30 = sshll.u32 %s247_s27, 4  ;;  %s1803_s13 = scalar_lea.sflag [#allocation4], %s2586_s7  ;;  %s3106_s30 = int_to_ptr.vmem [resolvable:$true] %s1822_s30 }
  0x78   : > { %v2170_v26 = vld [vmem:[%s2590_s10 + $0xc0] sm:$0xff]   ;;  %v2171_v27 = vld [vmem:[%s2590_s10 + $0x48] sm:$0xff]   ;;  %v2173_v29 = vld [vmem:[%s2590_s10 + $0x50] sm:$0xff]   ;;  %s2275_s28 = scalar_lea.vmem %s3106_s30, 256  ;;  %p3269_p0 = scmp.ne.s32.totalorder %s3242_s11, 0 }
  0x79   : > { %v2172_v28 = vld [vmem:[%s2590_s10 + $0xc8] sm:$0xff]   ;;  %v2174_v30 = vld [vmem:[%s2590_s10 + $0xd0] sm:$0xff]   ;;  %v2175_v31 = vld [vmem:[%s2590_s10 + $0x58] sm:$0xff]   ;;  %p2276_p11 = scmp.ne.s32.totalorder %s3106_s30, %s2275_s28  ;;  %s2387_s20 = smov [#allocation8]  }
  0x7a   : > { %631 = vmatpush1.bf16.msra.mxu0 %v2149_v6  ;;  %2062 = vmatpush1.bf16.msra.mxu1 %v2149_v6  ;;  %v2176_v32 = vld [vmem:[%s2590_s10 + $0xd8] sm:$0xff]   ;;  %v2177_v33 = vld [vmem:[%s2590_s10 + $0x60] sm:$0xff]   ;;  %v2179_v35 = vld [vmem:[%s2590_s10 + $0x68] sm:$0xff]   ;;  %s2279_s24 = sshll.u32 %s2387_s20, 4  ;;  %s2280_s24 = int_to_ptr.vmem [resolvable:$false] %s2279_s24 }
  0x7b   : > { %632 = vmatprep.subr.bf16.mxu0 %v2150_v7  ;;  %2059 = vmatprep.subr.bf16.mxu1 %v2150_v7  ;;  %v2178_v34 = vld [vmem:[%s2590_s10 + $0xe0] sm:$0xff]   ;;  %v2180_v36 = vld [vmem:[%s2590_s10 + $0xe8] sm:$0xff]   ;;  %v2181_v37 = vld [vmem:[%s2590_s10 + $0x70] sm:$0xff]   ;;  %p2277_p1 = pnand %p2276_p11, %p3269_p0  ;;  %s2281_s29 = scalar_lea.vmem %s2280_s24, 512 }
  0x7c   : > { %v2182_v38 = vld [vmem:[%s2590_s10 + $0xf0] sm:$0xff]   ;;  %v2183_v39 = vld [vmem:[%s2590_s10 + $0x78] sm:$0xff]   ;;  %p2282_p7 = scmp.lt.s32.totalorder %s3106_s30, %s2280_s24  ;;  %p2283_p9 = scmp.lt.s32.totalorder %s2281_s29, %s2275_s28 }
  0x7d   : > { %v2184_v40 = vld [vmem:[%s2590_s10 + $0xf8] sm:$0xff]   ;;  %p2278_p3 = pneg %p2277_p1 }
  0x7e   : > { %633 = vmatpush1.bf16.msra.mxu0 %v2152_v8  ;;  %2063 = vmatpush1.bf16.msra.mxu1 %v2152_v8  ;;  %p2284_p12 = por %p2283_p9, %p2282_p7 }
  0x80   : > { %p2285_p2 = pnand %p2284_p12, %p2278_p3 }
  0x81   : > { %2012 = vmatmul.mubr.msk.bf16.vlgmr.msra.gmra.mrb[0].mxu0 %vm529_vm0, %v2153_v9  ;;  %2028 = vmatmul.mubr.msk.bf16.vlgmr.msra.gmra.mrb[0].mxu1 %vm529_vm0, %v2154_v10 }
  0x82   : > { %668 = vmatprep.mubr.bf16.mxu0 %v2386_v0  ;;  %828 = vmatprep.mubr.bf16.mxu1 %v2386_v0 }
  0x89   : > { %2013 = vmatmul.mubr.msk.bf16.gmra.mrb[4].mxu0 %vm529_vm0, %v2155_v11  ;;  %2029 = vmatmul.mubr.msk.bf16.gmra.mrb[4].mxu1 %vm529_vm0, %v2156_v12 }
  0x8a   : > { %678 = vmatprep.mubr.bf16.mxu0 %v2386_v0  ;;  %838 = vmatprep.mubr.bf16.mxu1 %v2386_v0 }
  0x91   : > { %2014 = vmatmul.mubr.msk.bf16.gmra.mrb[8].mxu0 %vm529_vm0, %v2157_v13  ;;  %2030 = vmatmul.mubr.msk.bf16.gmra.mrb[8].mxu1 %vm529_vm0, %v2158_v14 }
  0x92   : > { %688 = vmatprep.mubr.bf16.mxu0 %v2386_v0  ;;  %848 = vmatprep.mubr.bf16.mxu1 %v2386_v0 }
  0x99   : > { %2015 = vmatmul.mubr.msk.bf16.gmra.mrb[12].mxu0 %vm529_vm0, %v2159_v15  ;;  %2031 = vmatmul.mubr.msk.bf16.gmra.mrb[12].mxu1 %vm529_vm0, %v2160_v16 }
  0x9a   : > { %698 = vmatprep.mubr.bf16.mxu0 %v2386_v0  ;;  %858 = vmatprep.mubr.bf16.mxu1 %v2386_v0 }
  0xa1   : > { %2016 = vmatmul.mubr.msk.bf16.gmra.mrb[16].mxu0 %vm529_vm0, %v2161_v17  ;;  %2032 = vmatmul.mubr.msk.bf16.gmra.mrb[16].mxu1 %vm529_vm0, %v2162_v18 }
  0xa2   : > { %708 = vmatprep.mubr.bf16.mxu0 %v2386_v0  ;;  %868 = vmatprep.mubr.bf16.mxu1 %v2386_v0 }
  0xa9   : > { %2017 = vmatmul.mubr.msk.bf16.gmra.mrb[20].mxu0 %vm529_vm0, %v2163_v19  ;;  %2033 = vmatmul.mubr.msk.bf16.gmra.mrb[20].mxu1 %vm529_vm0, %v2164_v20  ;;  %v2698_v19 = vld [vmem:[#allocation7] sm:$0xff]  ;;  %v2700_v20 = vld [vmem:[#allocation7 + $0x8] sm:$0xff] }
  0xaa   : > { %718 = vmatprep.mubr.bf16.mxu0 %v2386_v0  ;;  %878 = vmatprep.mubr.bf16.mxu1 %v2386_v0 }
  0xb1   : > { %2018 = vmatmul.mubr.msk.bf16.gmra.mrb[24].mxu0 %vm529_vm0, %v2165_v21  ;;  %2034 = vmatmul.mubr.msk.bf16.gmra.mrb[24].mxu1 %vm529_vm0, %v2166_v22 }
  0xb2   : > { %728 = vmatprep.mubr.bf16.mxu0 %v2386_v0  ;;  %888 = vmatprep.mubr.bf16.mxu1 %v2386_v0 }
  0xb9   : > { %2019 = vmatmul.mubr.msk.bf16.gmra.mrb[28].mxu0 %vm529_vm0, %v2167_v23  ;;  %2035 = vmatmul.mubr.msk.bf16.gmra.mrb[28].mxu1 %vm529_vm0, %v2168_v24  ;;  %v1429_v23 = vmul.f32 2.0, %v2698_v19  ;;  %v1433_v24 = vsub.s32 0, %v2696_v60 }
  0xba   : > { %738 = vmatprep.mubr.bf16.mxu0 %v2386_v0  ;;  %898 = vmatprep.mubr.bf16.mxu1 %v2386_v0 }
  0xc1   : > { %2020 = vmatmul.mubr.msk.bf16.gmra.mrb[32].mxu0 %vm529_vm0, %v2169_v25  ;;  %2036 = vmatmul.mubr.msk.bf16.gmra.mrb[32].mxu1 %vm529_vm0, %v2170_v26  ;;  %v1430_v25 = vmul.f32 2.0, %v2700_v20 }
  0xc2   : > { %748 = vmatprep.mubr.bf16.mxu0 %v2386_v0  ;;  %908 = vmatprep.mubr.bf16.mxu1 %v2386_v0 }
  0xc9   : > { %2021 = vmatmul.mubr.msk.bf16.gmra.mrb[36].mxu0 %vm529_vm0, %v2171_v27  ;;  %2037 = vmatmul.mubr.msk.bf16.gmra.mrb[36].mxu1 %vm529_vm0, %v2172_v28 }
  0xca   : > { %758 = vmatprep.mubr.bf16.mxu0 %v2386_v0  ;;  %918 = vmatprep.mubr.bf16.mxu1 %v2386_v0 }
  0xd1   : > { %2022 = vmatmul.mubr.msk.bf16.gmra.mrb[40].mxu0 %vm529_vm0, %v2173_v29  ;;  %2038 = vmatmul.mubr.msk.bf16.gmra.mrb[40].mxu1 %vm529_vm0, %v2174_v30 }
  0xd2   : > { %768 = vmatprep.mubr.bf16.mxu0 %v2386_v0  ;;  %928 = vmatprep.mubr.bf16.mxu1 %v2386_v0 }
  0xd9   : > { %2023 = vmatmul.mubr.msk.bf16.gmra.mrb[44].mxu0 %vm529_vm0, %v2175_v31  ;;  %2039 = vmatmul.mubr.msk.bf16.gmra.mrb[44].mxu1 %vm529_vm0, %v2176_v32 }
  0xda   : > { %778 = vmatprep.mubr.bf16.mxu0 %v2386_v0  ;;  %938 = vmatprep.mubr.bf16.mxu1 %v2386_v0 }
  0xe1   : > { %2024 = vmatmul.mubr.msk.bf16.gmra.mrb[48].mxu0 %vm529_vm0, %v2177_v33  ;;  %2040 = vmatmul.mubr.msk.bf16.gmra.mrb[48].mxu1 %vm529_vm0, %v2178_v34 }
  0xe2   : > { %788 = vmatprep.mubr.bf16.mxu0 %v2386_v0  ;;  %948 = vmatprep.mubr.bf16.mxu1 %v2386_v0 }
  0xe9   : > { %2025 = vmatmul.mubr.msk.bf16.gmra.mrb[52].mxu0 %vm529_vm0, %v2179_v35  ;;  %2041 = vmatmul.mubr.msk.bf16.gmra.mrb[52].mxu1 %vm529_vm0, %v2180_v36 }
  0xea   : > { %798 = vmatprep.mubr.bf16.mxu0 %v2386_v0  ;;  %958 = vmatprep.mubr.bf16.mxu1 %v2386_v0 }
  0xf1   : > { %2026 = vmatmul.mubr.msk.bf16.gmra.mrb[56].mxu0 %vm529_vm0, %v2181_v37  ;;  %2042 = vmatmul.mubr.msk.bf16.gmra.mrb[56].mxu1 %vm529_vm0, %v2182_v38 }
  0xf2   : > { %808 = vmatprep.mubr.bf16.mxu0 %v2386_v0  ;;  %968 = vmatprep.mubr.bf16.mxu1 %v2386_v0 }
  0xf9   : > { %2027 = vmatmul.mubr.msk.bf16.gmra.mrb[60].mxu0 %vm529_vm0, %v2183_v39  ;;  %2043 = vmatmul.mubr.msk.bf16.gmra.mrb[60].mxu1 %vm529_vm0, %v2184_v40 }
 0x154   : > { %v660_v41 = vpop.f32.mrb[0].mxu0  ;;  %v820_v42 = vpop.f32.mrb[0].mxu1 }
 0x155   : > { %v662_v43 = vpop.f32.mrb[1].mxu0  ;;  %v822_v44 = vpop.f32.mrb[1].mxu1 }
 0x156   : > { %v664_v45 = vpop.f32.mrb[2].mxu0  ;;  %v824_v46 = vpop.f32.mrb[2].mxu1 }
 0x157   : > { %v979_v48 = vadd.f32 %v664_v45, %v660_v41  ;;  %v1203_v49 = vmax.f32 %v660_v41, %v664_v45  ;;  %v666_v50 = vpop.f32.mrb[3].mxu0  ;;  %v1083_v51 = vadd.f32 %v824_v46, %v820_v42  ;;  %v1307_v52 = vmax.f32 %v820_v42, %v824_v46  ;;  %v826_v53 = vpop.f32.mrb[3].mxu1 }
 0x158   : > { %v992_v54 = vadd.f32 %v666_v50, %v662_v43  ;;  %v1216_v55 = vmax.f32 %v662_v43, %v666_v50  ;;  %v1096_v56 = vadd.f32 %v826_v53, %v822_v44  ;;  %v1320_v57 = vmax.f32 %v822_v44, %v826_v53 }
 0x159   : > { %v2705_v50 = vrot.slane %v1429_v23, %v1433_v24  ;;  %v2709_v53 = vrot.slane %v1430_v25, %v1433_v24 }
 0x15c   : > { %v670_v58 = vpop.f32.mrb[4].mxu0  ;;  %v830_v59 = vpop.f32.mrb[4].mxu1 }
 0x15d   : > { %v980_v61 = vadd.f32 %v979_v48, %v670_v58  ;;  %v1204_v62 = vmax.f32 %v1203_v49, %v670_v58  ;;  %v1084_v63 = vadd.f32 %v1083_v51, %v830_v59  ;;  %v1308_v0 = vmax.f32 %v1307_v52, %v830_v59  ;;  %v672_v1 = vpop.f32.mrb[5].mxu0  ;;  %v832_v2 = vpop.f32.mrb[5].mxu1 }
 0x15e   : > { %v993_v3 = vadd.f32 %v992_v54, %v672_v1  ;;  %v1217_v4 = vmax.f32 %v1216_v55, %v672_v1  ;;  %v1097_v5 = vadd.f32 %v1096_v56, %v832_v2  ;;  %v1321_v6 = vmax.f32 %v1320_v57, %v832_v2  ;;  %v674_v7 = vpop.f32.mrb[6].mxu0  ;;  %v834_v8 = vpop.f32.mrb[6].mxu1 }
 0x15f   : > { %v981_v9 = vadd.f32 %v980_v61, %v674_v7  ;;  %v1205_v10 = vmax.f32 %v1204_v62, %v674_v7  ;;  %v1085_v11 = vadd.f32 %v1084_v63, %v834_v8  ;;  %v1309_v12 = vmax.f32 %v1308_v0, %v834_v8  ;;  %v676_v13 = vpop.f32.mrb[7].mxu0  ;;  %v836_v14 = vpop.f32.mrb[7].mxu1 }
 0x160   : > { %v994_v15 = vadd.f32 %v993_v3, %v676_v13  ;;  %v1218_v16 = vmax.f32 %v1217_v4, %v676_v13  ;;  %v1098_v17 = vadd.f32 %v1097_v5, %v836_v14  ;;  %v1322_v18 = vmax.f32 %v1321_v6, %v836_v14 }
 0x161   : > { %v1610_v51 = vsub.s32 1, %v2696_v60  ;;  %v1634_v52 = vsub.s32 2, %v2696_v60 }
 0x164   : > { %v680_v21 = vpop.f32.mrb[8].mxu0  ;;  %v840_v22 = vpop.f32.mrb[8].mxu1 }
 0x165   : > { %v982_v26 = vadd.f32 %v981_v9, %v680_v21  ;;  %v1206_v27 = vmax.f32 %v1205_v10, %v680_v21  ;;  %v1086_v28 = vadd.f32 %v1085_v11, %v840_v22  ;;  %v1310_v29 = vmax.f32 %v1309_v12, %v840_v22  ;;  %v682_v30 = vpop.f32.mrb[9].mxu0  ;;  %v842_v31 = vpop.f32.mrb[9].mxu1 }
 0x166   : > { %v995_v32 = vadd.f32 %v994_v15, %v682_v30  ;;  %v1219_v33 = vmax.f32 %v1218_v16, %v682_v30  ;;  %v1099_v34 = vadd.f32 %v1098_v17, %v842_v31  ;;  %v1323_v35 = vmax.f32 %v1322_v18, %v842_v31  ;;  %v684_v36 = vpop.f32.mrb[10].mxu0  ;;  %v844_v37 = vpop.f32.mrb[10].mxu1 }
 0x167   : > { %v983_v38 = vadd.f32 %v982_v26, %v684_v36  ;;  %v1207_v39 = vmax.f32 %v1206_v27, %v684_v36  ;;  %v1087_v40 = vadd.f32 %v1086_v28, %v844_v37  ;;  %v1311_v41 = vmax.f32 %v1310_v29, %v844_v37  ;;  %v686_v42 = vpop.f32.mrb[11].mxu0  ;;  %v846_v43 = vpop.f32.mrb[11].mxu1 }
 0x168   : > { %v996_v44 = vadd.f32 %v995_v32, %v686_v42  ;;  %v1220_v45 = vmax.f32 %v1219_v33, %v686_v42  ;;  %v1100_v46 = vadd.f32 %v1099_v34, %v846_v43  ;;  %v1324_v47 = vmax.f32 %v1323_v35, %v846_v43 }
 0x16c   : > { %v690_v48 = vpop.f32.mrb[12].mxu0  ;;  %v850_v49 = vpop.f32.mrb[12].mxu1 }
 0x16d   : > { %v984_v54 = vadd.f32 %v983_v38, %v690_v48  ;;  %v1208_v55 = vmax.f32 %v1207_v39, %v690_v48  ;;  %v1088_v56 = vadd.f32 %v1087_v40, %v850_v49  ;;  %v1312_v57 = vmax.f32 %v1311_v41, %v850_v49  ;;  %v692_v58 = vpop.f32.mrb[13].mxu0  ;;  %v852_v59 = vpop.f32.mrb[13].mxu1 }
 0x16e   : > { %v997_v61 = vadd.f32 %v996_v44, %v692_v58  ;;  %v1221_v62 = vmax.f32 %v1220_v45, %v692_v58  ;;  %v1101_v63 = vadd.f32 %v1100_v46, %v852_v59  ;;  %v1325_v0 = vmax.f32 %v1324_v47, %v852_v59  ;;  %v694_v1 = vpop.f32.mrb[14].mxu0  ;;  %v854_v2 = vpop.f32.mrb[14].mxu1 }
 0x16f   : > { %v985_v3 = vadd.f32 %v984_v54, %v694_v1  ;;  %v1209_v4 = vmax.f32 %v1208_v55, %v694_v1  ;;  %v1089_v5 = vadd.f32 %v1088_v56, %v854_v2  ;;  %v1313_v6 = vmax.f32 %v1312_v57, %v854_v2  ;;  %v696_v7 = vpop.f32.mrb[15].mxu0  ;;  %v856_v8 = vpop.f32.mrb[15].mxu1 }
 0x170   : > { %v998_v9 = vadd.f32 %v997_v61, %v696_v7  ;;  %v1222_v10 = vmax.f32 %v1221_v62, %v696_v7  ;;  %v1102_v11 = vadd.f32 %v1101_v63, %v856_v8  ;;  %v1326_v12 = vmax.f32 %v1325_v0, %v856_v8 }
 0x171   : > { %v986_v13 = vrot.slane %v985_v3, 4  ;;  %v1210_v14 = vrot.slane %v1209_v4, 4  ;;  %v1090_v15 = vrot.slane %v1089_v5, 4  ;;  %v1314_v16 = vrot.slane %v1313_v6, 4 }
 0x172   : > { %v999_v17 = vrot.slane %v998_v9, 4  ;;  %v1223_v18 = vrot.slane %v1222_v10, 4  ;;  %v1103_v21 = vrot.slane %v1102_v11, 4  ;;  %v1327_v22 = vrot.slane %v1326_v12, 4 }
 0x173   : > { %v987_v23 = vadd.f32 %v986_v13, %v985_v3  ;;  %v1211_v24 = vmax.f32 %v1209_v4, %v1210_v14  ;;  %v1091_v25 = vadd.f32 %v1090_v15, %v1089_v5  ;;  %v1315_v26 = vmax.f32 %v1313_v6, %v1314_v16 }
 0x174   : > { %v1000_v27 = vadd.f32 %v999_v17, %v998_v9  ;;  %v1224_v28 = vmax.f32 %v1222_v10, %v1223_v18  ;;  %v1104_v29 = vadd.f32 %v1103_v21, %v1102_v11  ;;  %v1328_v30 = vmax.f32 %v1326_v12, %v1327_v22  ;;  %v2711_v31 = vpop.f32.mrb[16].mxu0  ;;  %v2713_v32 = vpop.f32.mrb[16].mxu1 }
 0x175   : > { %v988_v33 = vrot.slane %v987_v23, 2  ;;  %v1212_v34 = vrot.slane %v1211_v24, 2  ;;  %v1092_v35 = vrot.slane %v1091_v25, 2  ;;  %v1316_v36 = vrot.slane %v1315_v26, 2  ;;  %v2715_v37 = vpop.f32.mrb[17].mxu0  ;;  %v2717_v38 = vpop.f32.mrb[17].mxu1 }
 0x176   : > { %v1001_v39 = vrot.slane %v1000_v27, 2  ;;  %v1225_v40 = vrot.slane %v1224_v28, 2  ;;  %v1105_v41 = vrot.slane %v1104_v29, 2  ;;  %v1329_v42 = vrot.slane %v1328_v30, 2  ;;  %v704_v43 = vpop.f32.mrb[18].mxu0  ;;  %v864_v44 = vpop.f32.mrb[18].mxu1 }
 0x177   : > { %v989_v45 = vadd.f32 %v988_v33, %v987_v23  ;;  %v1213_v46 = vmax.f32 %v1211_v24, %v1212_v34  ;;  %v1093_v47 = vadd.f32 %v1092_v35, %v1091_v25  ;;  %v1317_v48 = vmax.f32 %v1315_v26, %v1316_v36  ;;  %v706_v49 = vpop.f32.mrb[19].mxu0  ;;  %v2719_v54 = vpop.f32.mrb[19].mxu1 }
 0x178   : > { %v1002_v55 = vadd.f32 %v1001_v39, %v1000_v27  ;;  %v1226_v56 = vmax.f32 %v1224_v28, %v1225_v40  ;;  %v1106_v57 = vadd.f32 %v1105_v41, %v1104_v29  ;;  %v1330_v58 = vmax.f32 %v1328_v30, %v1329_v42 }
 0x179   : > { %v990_v59 = vrot.slane %v989_v45, 1  ;;  %v1214_v61 = vrot.slane %v1213_v46, 1  ;;  %v1094_v62 = vrot.slane %v1093_v47, 1  ;;  %v1318_v63 = vrot.slane %v1317_v48, 1 }
 0x17a   : > { %v1003_v0 = vrot.slane %v1002_v55, 1  ;;  %v1227_v1 = vrot.slane %v1226_v56, 1  ;;  %v1107_v2 = vrot.slane %v1106_v57, 1  ;;  %v1331_v3 = vrot.slane %v1330_v58, 1 }
 0x17b   : > { %v991_v4 = vadd.f32 %v990_v59, %v989_v45  ;;  %v1215_v5 = vmax.f32 %v1213_v46, %v1214_v61  ;;  %v1095_v6 = vadd.f32 %v1094_v62, %v1093_v47  ;;  %v1319_v7 = vmax.f32 %v1317_v48, %v1318_v63 }
 0x17c   : > { %v1004_v8 = vadd.f32 %v1003_v0, %v1002_v55  ;;  %v1228_v9 = vmax.f32 %v1226_v56, %v1227_v1  ;;  %v1108_v10 = vadd.f32 %v1107_v2, %v1106_v57  ;;  %v1332_v11 = vmax.f32 %v1330_v58, %v1331_v3  ;;  %v710_v12 = vpop.f32.mrb[20].mxu0  ;;  %v870_v13 = vpop.f32.mrb[20].mxu1 }
 0x17d   : > { %v1187_v14 = vmul.f32 0.015625, %v991_v4  ;;  %v1195_v15 = vmul.f32 0.015625, %v1095_v6  ;;  %v1005_v16 = vadd.f32 %v704_v43, %v2711_v31  ;;  %v1229_v17 = vmax.f32 %v2711_v31, %v704_v43  ;;  %v712_v18 = vpop.f32.mrb[21].mxu0  ;;  %v872_v21 = vpop.f32.mrb[21].mxu1 }
 0x17e   : > { %v1188_v22 = vmul.f32 0.015625, %v1004_v8  ;;  %v1196_v23 = vmul.f32 0.015625, %v1108_v10  ;;  %v1018_v24 = vadd.f32 %v706_v49, %v2715_v37  ;;  %v1242_v25 = vmax.f32 %v2715_v37, %v706_v49  ;;  %v714_v26 = vpop.f32.mrb[22].mxu0  ;;  %v874_v27 = vpop.f32.mrb[22].mxu1 }
 0x17f   : > { %v1413_v28 = vadd.f32 %v1215_v5, %v1187_v14  ;;  %v1421_v29 = vadd.f32 %v1319_v7, %v1195_v15  ;;  %v1109_v30 = vadd.f32 %v864_v44, %v2713_v32  ;;  %v1333_v33 = vmax.f32 %v2713_v32, %v864_v44  ;;  %v716_v34 = vpop.f32.mrb[23].mxu0  ;;  %v876_v35 = vpop.f32.mrb[23].mxu1 }
 0x180   : > { %v1414_v36 = vadd.f32 %v1228_v9, %v1188_v22  ;;  %v1422_v31 = vadd.f32 %v1332_v11, %v1196_v23  ;;  %v1122_v39 = vadd.f32 %v2719_v54, %v2717_v38  ;;  %v1346_v40 = vmax.f32 %v2717_v38, %v2719_v54 }
 0x181   : > { %v2732_v37 = vadd.f32 %v2705_v50, %v1413_v28  ;;  %v1006_v41 = vadd.f32 %v1005_v16, %v710_v12  ;;  %v1230_v42 = vmax.f32 %v1229_v17, %v710_v12  ;;  %v2737_v43 = vrot.slane %v2698_v19, %v1610_v51 }
 0x182   : > { %v1110_v32 = vadd.f32 %v1109_v30, %v870_v13  ;;  %v1334_v44 = vmax.f32 %v1333_v33, %v870_v13  ;;  %v2742_v45 = vrot.slane %v2698_v19, %v1634_v52  ;;  %v2745_v46 = vadd.f32 %v2705_v50, %v1421_v29 }
 0x183   : > { %3247 = vst [vmem:[#allocation15_spill] sm:$0xff] %v2732_v37  ;;  %v2750_v38 = vrot.slane %v2700_v20, %v1610_v51  ;;  %v1019_v47 = vadd.f32 %v1018_v24, %v712_v18  ;;  %v2753_v48 = vadd.f32 %v2709_v53, %v1414_v36  ;;  %v2758_v49 = vrot.slane %v2700_v20, %v1634_v52 }
 0x184   : > { %3248 = vst [vmem:[#allocation16_spill] sm:$0xff] %v2745_v46  ;;  %v2761_v19 = vadd.f32 %v2709_v53, %v1422_v31  ;;  %v1243_v54 = vmax.f32 %v1242_v25, %v712_v18  ;;  %v720_v55 = vpop.f32.mrb[24].mxu0  ;;  %v880_v56 = vpop.f32.mrb[24].mxu1  ;;  %v2765_v57 = vmul.f32 %v2732_v37, %v2732_v37  ;;  %v1123_v51 = vadd.f32 %v1122_v39, %v872_v21 }
 0x185   : > { %3249 = vst [vmem:[#allocation17_spill] sm:$0xff] %v2753_v48  ;;  %v1347_v58 = vmax.f32 %v1346_v40, %v872_v21  ;;  %v1007_v59 = vadd.f32 %v1006_v41, %v714_v26  ;;  %v722_v61 = vpop.f32.mrb[25].mxu0  ;;  %v882_v62 = vpop.f32.mrb[25].mxu1  ;;  %v1616_v60 = vmul.f32 %v2737_v43, %v2732_v37  ;;  %v1231_v20 = vmax.f32 %v1230_v42, %v714_v26 }
 0x186   : > { %3250 = vst [vmem:[#allocation18_spill] sm:$0xff] %v2761_v19  ;;  %v1111_v52 = vadd.f32 %v1110_v32, %v874_v27  ;;  %v1335_v63 = vmax.f32 %v1334_v44, %v874_v27  ;;  %v724_v0 = vpop.f32.mrb[26].mxu0  ;;  %v884_v1 = vpop.f32.mrb[26].mxu1  ;;  %v2771_v2 = vmul.f32 %v2737_v43, %v2745_v46  ;;  %v1020_v3 = vadd.f32 %v1019_v47, %v716_v34 }
 0x187   : > { %v1244_v4 = vmax.f32 %v1243_v54, %v716_v34  ;;  %v1124_v5 = vadd.f32 %v1123_v51, %v876_v35  ;;  %v726_v6 = vpop.f32.mrb[27].mxu0  ;;  %v886_v7 = vpop.f32.mrb[27].mxu1  ;;  %v1617_v8 = vmul.f32 %v2750_v38, %v2753_v48  ;;  %v1348_v9 = vmax.f32 %v1347_v58, %v876_v35 }
 0x188   : > { %v1008_v10 = vadd.f32 %v1007_v59, %v720_v55  ;;  %v1232_v11 = vmax.f32 %v1231_v20, %v720_v55  ;;  %v1112_v12 = vadd.f32 %v1111_v52, %v880_v56  ;;  %v1336_v13 = vmax.f32 %v1335_v63, %v880_v56 }
 0x189   : > { %v1021_v14 = vadd.f32 %v1020_v3, %v722_v61  ;;  %v1245_v15 = vmax.f32 %v1244_v4, %v722_v61  ;;  %v1125_v16 = vadd.f32 %v1124_v5, %v882_v62  ;;  %v1349_v17 = vmax.f32 %v1348_v9, %v882_v62 }
 0x18a   : > { %v1009_v18 = vadd.f32 %v1008_v10, %v724_v0  ;;  %v1233_v21 = vmax.f32 %v1232_v11, %v724_v0  ;;  %v1113_v22 = vadd.f32 %v1112_v12, %v884_v1  ;;  %v1337_v23 = vmax.f32 %v1336_v13, %v884_v1 }
 0x18b   : > { %v1022_v24 = vadd.f32 %v1021_v14, %v726_v6  ;;  %v1246_v25 = vmax.f32 %v1245_v15, %v726_v6  ;;  %v2776_v26 = vadd.f32 %v2742_v45, %v1616_v60  ;;  %v2779_v27 = vadd.f32 %v2758_v49, %v1617_v8 }
 0x18c   : > { %v1126_v28 = vadd.f32 %v1125_v16, %v886_v7  ;;  %v1350_v29 = vmax.f32 %v1349_v17, %v886_v7  ;;  %v730_v30 = vpop.f32.mrb[28].mxu0  ;;  %v890_v33 = vpop.f32.mrb[28].mxu1 }
 0x18d   : > { %3251 = vst [vmem:[#allocation19_spill] sm:$0xff] %v2776_v26  ;;  %3252 = vst [vmem:[#allocation20_spill] sm:$0xff] %v2779_v27  ;;  %v1010_v34 = vadd.f32 %v1009_v18, %v730_v30  ;;  %v1234_v35 = vmax.f32 %v1233_v21, %v730_v30  ;;  %v1114_v36 = vadd.f32 %v1113_v22, %v890_v33  ;;  %v732_v39 = vpop.f32.mrb[29].mxu0  ;;  %v892_v40 = vpop.f32.mrb[29].mxu1 }
 0x18e   : > { %v1338_v31 = vmax.f32 %v1337_v23, %v890_v33  ;;  %v1023_v41 = vadd.f32 %v1022_v24, %v732_v39  ;;  %v1247_v42 = vmax.f32 %v1246_v25, %v732_v39  ;;  %v1127_v32 = vadd.f32 %v1126_v28, %v892_v40  ;;  %v734_v47 = vpop.f32.mrb[30].mxu0  ;;  %v894_v54 = vpop.f32.mrb[30].mxu1 }
 0x18f   : > { %v1351_v44 = vmax.f32 %v1350_v29, %v892_v40  ;;  %v1011_v55 = vadd.f32 %v1010_v34, %v734_v47  ;;  %v1235_v56 = vmax.f32 %v1234_v35, %v734_v47  ;;  %v1115_v51 = vadd.f32 %v1114_v36, %v894_v54  ;;  %v736_v59 = vpop.f32.mrb[31].mxu0  ;;  %v896_v61 = vpop.f32.mrb[31].mxu1 }
 0x190   : > { %v1339_v58 = vmax.f32 %v1338_v31, %v894_v54  ;;  %v1024_v62 = vadd.f32 %v1023_v41, %v736_v59  ;;  %v1248_v60 = vmax.f32 %v1247_v42, %v736_v59  ;;  %v1128_v20 = vadd.f32 %v1127_v32, %v896_v61 }
 0x191   : > { %v1352_v52 = vmax.f32 %v1351_v44, %v896_v61  ;;  %v1012_v63 = vrot.slane %v1011_v55, 4  ;;  %v1236_v0 = vrot.slane %v1235_v56, 4  ;;  %v1116_v1 = vrot.slane %v1115_v51, 4 }
 0x192   : > { %v1340_v3 = vrot.slane %v1339_v58, 4  ;;  %v1025_v4 = vrot.slane %v1024_v62, 4  ;;  %v1249_v5 = vrot.slane %v1248_v60, 4  ;;  %v1129_v6 = vrot.slane %v1128_v20, 4 }
 0x193   : > { %v1353_v7 = vrot.slane %v1352_v52, 4  ;;  %v1013_v8 = vadd.f32 %v1012_v63, %v1011_v55  ;;  %v1237_v9 = vmax.f32 %v1235_v56, %v1236_v0  ;;  %v1117_v10 = vadd.f32 %v1116_v1, %v1115_v51 }
 0x194   : > { %v1341_v11 = vmax.f32 %v1339_v58, %v1340_v3  ;;  %v1026_v12 = vadd.f32 %v1025_v4, %v1024_v62  ;;  %v1250_v13 = vmax.f32 %v1248_v60, %v1249_v5  ;;  %v1130_v14 = vadd.f32 %v1129_v6, %v1128_v20  ;;  %v2781_v16 = vpop.f32.mrb[32].mxu0  ;;  %v2783_v17 = vpop.f32.mrb[32].mxu1 }
 0x195   : > { %v1354_v15 = vmax.f32 %v1352_v52, %v1353_v7  ;;  %v1014_v18 = vrot.slane %v1013_v8, 2  ;;  %v1238_v21 = vrot.slane %v1237_v9, 2  ;;  %v1118_v22 = vrot.slane %v1117_v10, 2  ;;  %v2785_v24 = vpop.f32.mrb[33].mxu0  ;;  %v2787_v25 = vpop.f32.mrb[33].mxu1 }
 0x196   : > { %v1342_v23 = vrot.slane %v1341_v11, 2  ;;  %v1027_v28 = vrot.slane %v1026_v12, 2  ;;  %v1251_v29 = vrot.slane %v1250_v13, 2  ;;  %v1131_v30 = vrot.slane %v1130_v14, 2  ;;  %v744_v34 = vpop.f32.mrb[34].mxu0  ;;  %v904_v35 = vpop.f32.mrb[34].mxu1 }
 0x197   : > { %v1355_v33 = vrot.slane %v1354_v15, 2  ;;  %v1015_v36 = vadd.f32 %v1014_v18, %v1013_v8  ;;  %v1239_v31 = vmax.f32 %v1237_v9, %v1238_v21  ;;  %v1119_v39 = vadd.f32 %v1118_v22, %v1117_v10  ;;  %v746_v41 = vpop.f32.mrb[35].mxu0  ;;  %v906_v42 = vpop.f32.mrb[35].mxu1 }
 0x198   : > { %v1343_v40 = vmax.f32 %v1341_v11, %v1342_v23  ;;  %v1028_v32 = vadd.f32 %v1027_v28, %v1026_v12  ;;  %v1252_v44 = vmax.f32 %v1250_v13, %v1251_v29  ;;  %v1132_v47 = vadd.f32 %v1131_v30, %v1130_v14 }
 0x199   : > { %v1356_v54 = vmax.f32 %v1354_v15, %v1355_v33  ;;  %v1016_v55 = vrot.slane %v1015_v36, 1  ;;  %v1240_v56 = vrot.slane %v1239_v31, 1  ;;  %v1120_v51 = vrot.slane %v1119_v39, 1 }
 0x19a   : > { %v1344_v58 = vrot.slane %v1343_v40, 1  ;;  %v1029_v59 = vrot.slane %v1028_v32, 1  ;;  %v1253_v61 = vrot.slane %v1252_v44, 1  ;;  %v1133_v62 = vrot.slane %v1132_v47, 1 }
 0x19b   : > { %v1357_v60 = vrot.slane %v1356_v54, 1  ;;  %v1017_v20 = vadd.f32 %v1016_v55, %v1015_v36  ;;  %v1241_v52 = vmax.f32 %v1239_v31, %v1240_v56  ;;  %v1121_v63 = vadd.f32 %v1120_v51, %v1119_v39 }
 0x19c   : > { %v1345_v0 = vmax.f32 %v1343_v40, %v1344_v58  ;;  %v1030_v1 = vadd.f32 %v1029_v59, %v1028_v32  ;;  %v1254_v3 = vmax.f32 %v1252_v44, %v1253_v61  ;;  %v1134_v4 = vadd.f32 %v1133_v62, %v1132_v47  ;;  %v750_v6 = vpop.f32.mrb[36].mxu0  ;;  %v910_v7 = vpop.f32.mrb[36].mxu1 }
 0x19d   : > { %v1358_v5 = vmax.f32 %v1356_v54, %v1357_v60  ;;  %v1189_v8 = vmul.f32 0.015625, %v1017_v20  ;;  %v1197_v9 = vmul.f32 0.015625, %v1121_v63  ;;  %v1031_v10 = vadd.f32 %v744_v34, %v2781_v16  ;;  %v752_v12 = vpop.f32.mrb[37].mxu0  ;;  %v912_v13 = vpop.f32.mrb[37].mxu1 }
 0x19e   : > { %v1255_v11 = vmax.f32 %v2781_v16, %v744_v34  ;;  %v1190_v14 = vmul.f32 0.015625, %v1030_v1  ;;  %v1198_v15 = vmul.f32 0.015625, %v1134_v4  ;;  %v1044_v18 = vadd.f32 %v746_v41, %v2785_v24  ;;  %v754_v22 = vpop.f32.mrb[38].mxu0  ;;  %v914_v23 = vpop.f32.mrb[38].mxu1 }
 0x19f   : > { %v1268_v21 = vmax.f32 %v2785_v24, %v746_v41  ;;  %v1415_v28 = vadd.f32 %v1241_v52, %v1189_v8  ;;  %v1423_v29 = vadd.f32 %v1345_v0, %v1197_v9  ;;  %v1135_v30 = vadd.f32 %v904_v35, %v2783_v17  ;;  %v756_v36 = vpop.f32.mrb[39].mxu0  ;;  %v916_v31 = vpop.f32.mrb[39].mxu1 }
 0x1a0   : > { %v1359_v33 = vmax.f32 %v2783_v17, %v904_v35  ;;  %v1416_v39 = vadd.f32 %v1254_v3, %v1190_v14  ;;  %v1424_v16 = vadd.f32 %v1358_v5, %v1198_v15  ;;  %v1148_v34 = vadd.f32 %v906_v42, %v2787_v25 }
 0x1a1   : > { %v1372_v40 = vmax.f32 %v2787_v25, %v906_v42  ;;  %v2799_v32 = vmul.f32 %v2753_v48, %v2753_v48  ;;  %v2803_v24 = vmul.f32 %v2750_v38, %v2761_v19  ;;  %v1032_v41 = vadd.f32 %v1031_v10, %v750_v6 }
 0x1a2   : > { %v1256_v44 = vmax.f32 %v1255_v11, %v750_v6  ;;  %v2807_v17 = vmul.f32 %v2776_v26, %v2776_v26  ;;  %v2810_v35 = vadd.f32 %v2705_v50, %v1415_v28  ;;  %v1136_v47 = vadd.f32 %v1135_v30, %v910_v7 }
 0x1a3   : > { %v1360_v54 = vmax.f32 %v1359_v33, %v910_v7  ;;  %v2814_v25 = vmul.f32 %v2779_v27, %v2779_v27  ;;  %v2817_v42 = vadd.f32 %v2709_v53, %v1416_v39  ;;  %v1045_v55 = vadd.f32 %v1044_v18, %v752_v12 }
 0x1a4   : > { %3253 = vst [vmem:[#allocation21_spill] sm:$0xff] %v2810_v35  ;;  %v1269_v56 = vmax.f32 %v1268_v21, %v752_v12  ;;  %v1149_v51 = vadd.f32 %v1148_v34, %v912_v13  ;;  %v1373_v58 = vmax.f32 %v1372_v40, %v912_v13  ;;  %v760_v59 = vpop.f32.mrb[40].mxu0  ;;  %v920_v61 = vpop.f32.mrb[40].mxu1  ;;  %v2821_v62 = vmul.f32 %v2745_v46, %v2745_v46 }
 0x1a5   : > { %3254 = vst [vmem:[#allocation22_spill] sm:$0xff] %v2817_v42  ;;  %v2825_v60 = vmul.f32 %v2761_v19, %v2761_v19  ;;  %v2828_v20 = vadd.f32 %v2705_v50, %v1423_v29  ;;  %v2831_v52 = vadd.f32 %v2709_v53, %v1424_v16  ;;  %v1033_v63 = vadd.f32 %v1032_v41, %v754_v22  ;;  %v762_v1 = vpop.f32.mrb[41].mxu0  ;;  %v922_v3 = vpop.f32.mrb[41].mxu1 }
 0x1a6   : > { %v1257_v0 = vmax.f32 %v1256_v44, %v754_v22  ;;  %v2835_v4 = vmul.f32 %v2810_v35, %v2810_v35  ;;  %v1618_v5 = vmul.f32 %v2737_v43, %v2810_v35  ;;  %v1137_v6 = vadd.f32 %v1136_v47, %v914_v23  ;;  %v764_v8 = vpop.f32.mrb[42].mxu0  ;;  %v924_v9 = vpop.f32.mrb[42].mxu1 }
 0x1a7   : > { %v1361_v7 = vmax.f32 %v1360_v54, %v914_v23  ;;  %v2841_v10 = vmul.f32 %v2817_v42, %v2817_v42  ;;  %v1046_v11 = vadd.f32 %v1045_v55, %v756_v36  ;;  %v1270_v12 = vmax.f32 %v1269_v56, %v756_v36  ;;  %v766_v14 = vpop.f32.mrb[43].mxu0  ;;  %v926_v15 = vpop.f32.mrb[43].mxu1 }
 0x1a8   : > { %v1150_v13 = vadd.f32 %v1149_v51, %v916_v31  ;;  %v2845_v18 = vmul.f32 %v2750_v38, %v2817_v42  ;;  %v1374_v21 = vmax.f32 %v1373_v58, %v916_v31  ;;  %v1034_v22 = vadd.f32 %v1033_v63, %v760_v59 }
 0x1a9   : > { %v1258_v28 = vmax.f32 %v1257_v0, %v760_v59  ;;  %v1138_v29 = vadd.f32 %v1137_v6, %v920_v61  ;;  %v1362_v23 = vmax.f32 %v1361_v7, %v920_v61  ;;  %v1047_v30 = vadd.f32 %v1046_v11, %v762_v1 }
 0x1aa   : > { %v1271_v33 = vmax.f32 %v1270_v12, %v762_v1  ;;  %v1151_v39 = vadd.f32 %v1150_v13, %v922_v3  ;;  %v1375_v16 = vmax.f32 %v1374_v21, %v922_v3  ;;  %v1035_v34 = vadd.f32 %v1034_v22, %v764_v8 }
 0x1ab   : > { %v1259_v40 = vmax.f32 %v1258_v28, %v764_v8  ;;  %v1139_v41 = vadd.f32 %v1138_v29, %v924_v9  ;;  %v1363_v36 = vmax.f32 %v1362_v23, %v924_v9  ;;  %v1048_v44 = vadd.f32 %v1047_v30, %v766_v14 }
 0x1ac   : > { %v1272_v47 = vmax.f32 %v1271_v33, %v766_v14  ;;  %v2849_v55 = vadd.f32 %v2742_v45, %v1618_v5  ;;  %v1152_v31 = vadd.f32 %v1151_v39, %v926_v15  ;;  %v1376_v56 = vmax.f32 %v1375_v16, %v926_v15  ;;  %v770_v51 = vpop.f32.mrb[44].mxu0  ;;  %v930_v58 = vpop.f32.mrb[44].mxu1 }
 0x1ad   : > { %v1036_v59 = vadd.f32 %v1035_v34, %v770_v51  ;;  %v1260_v61 = vmax.f32 %v1259_v40, %v770_v51  ;;  %v1140_v63 = vadd.f32 %v1139_v41, %v930_v58  ;;  %v1364_v0 = vmax.f32 %v1363_v36, %v930_v58  ;;  %v772_v1 = vpop.f32.mrb[45].mxu0  ;;  %v932_v3 = vpop.f32.mrb[45].mxu1 }
 0x1ae   : > { %3255 = vst [vmem:[#allocation23_spill] sm:$0xff] %v2849_v55  ;;  %v1049_v6 = vadd.f32 %v1048_v44, %v772_v1  ;;  %v1273_v7 = vmax.f32 %v1272_v47, %v772_v1  ;;  %v1153_v8 = vadd.f32 %v1152_v31, %v932_v3  ;;  %v1377_v9 = vmax.f32 %v1376_v56, %v932_v3  ;;  %v774_v11 = vpop.f32.mrb[46].mxu0  ;;  %v934_v12 = vpop.f32.mrb[46].mxu1 }
 0x1af   : > { %v1037_v13 = vadd.f32 %v1036_v59, %v774_v11  ;;  %v1261_v14 = vmax.f32 %v1260_v61, %v774_v11  ;;  %v1141_v5 = vadd.f32 %v1140_v63, %v934_v12  ;;  %v1365_v21 = vmax.f32 %v1364_v0, %v934_v12  ;;  %v776_v22 = vpop.f32.mrb[47].mxu0  ;;  %v936_v15 = vpop.f32.mrb[47].mxu1 }
 0x1b0   : > { %v1050_v28 = vadd.f32 %v1049_v6, %v776_v22  ;;  %v1274_v29 = vmax.f32 %v1273_v7, %v776_v22  ;;  %v1154_v23 = vadd.f32 %v1153_v8, %v936_v15  ;;  %v1378_v30 = vmax.f32 %v1377_v9, %v936_v15 }
 0x1b1   : > { %v1038_v33 = vrot.slane %v1037_v13, 4  ;;  %v1262_v39 = vrot.slane %v1261_v14, 4  ;;  %v1142_v16 = vrot.slane %v1141_v5, 4  ;;  %v1366_v34 = vrot.slane %v1365_v21, 4 }
 0x1b2   : > { %v1051_v40 = vrot.slane %v1050_v28, 4  ;;  %v1275_v41 = vrot.slane %v1274_v29, 4  ;;  %v1155_v36 = vrot.slane %v1154_v23, 4  ;;  %v1379_v44 = vrot.slane %v1378_v30, 4 }
 0x1b3   : > { %v1039_v47 = vadd.f32 %v1038_v33, %v1037_v13  ;;  %v1263_v31 = vmax.f32 %v1261_v14, %v1262_v39  ;;  %v1143_v56 = vadd.f32 %v1142_v16, %v1141_v5  ;;  %v1367_v51 = vmax.f32 %v1365_v21, %v1366_v34 }
 0x1b4   : > { %v1052_v58 = vadd.f32 %v1051_v40, %v1050_v28  ;;  %v1276_v59 = vmax.f32 %v1274_v29, %v1275_v41  ;;  %v1156_v61 = vadd.f32 %v1155_v36, %v1154_v23  ;;  %v1380_v63 = vmax.f32 %v1378_v30, %v1379_v44  ;;  %v2851_v0 = vpop.f32.mrb[48].mxu0  ;;  %v2853_v1 = vpop.f32.mrb[48].mxu1 }
 0x1b5   : > { %v1040_v3 = vrot.slane %v1039_v47, 2  ;;  %v1264_v6 = vrot.slane %v1263_v31, 2  ;;  %v1144_v7 = vrot.slane %v1143_v56, 2  ;;  %v1368_v8 = vrot.slane %v1367_v51, 2  ;;  %v2855_v9 = vpop.f32.mrb[49].mxu0  ;;  %v2857_v11 = vpop.f32.mrb[49].mxu1 }
 0x1b6   : > { %v1053_v12 = vrot.slane %v1052_v58, 2  ;;  %v1277_v13 = vrot.slane %v1276_v59, 2  ;;  %v1157_v14 = vrot.slane %v1156_v61, 2  ;;  %v1381_v5 = vrot.slane %v1380_v63, 2  ;;  %v784_v21 = vpop.f32.mrb[50].mxu0  ;;  %v944_v22 = vpop.f32.mrb[50].mxu1 }
 0x1b7   : > { %v1041_v15 = vadd.f32 %v1040_v3, %v1039_v47  ;;  %v1265_v28 = vmax.f32 %v1263_v31, %v1264_v6  ;;  %v1145_v29 = vadd.f32 %v1144_v7, %v1143_v56  ;;  %v1369_v23 = vmax.f32 %v1367_v51, %v1368_v8  ;;  %v786_v30 = vpop.f32.mrb[51].mxu0  ;;  %v946_v33 = vpop.f32.mrb[51].mxu1 }
 0x1b8   : > { %v1054_v39 = vadd.f32 %v1053_v12, %v1052_v58  ;;  %v1278_v16 = vmax.f32 %v1276_v59, %v1277_v13  ;;  %v1158_v34 = vadd.f32 %v1157_v14, %v1156_v61  ;;  %v1382_v40 = vmax.f32 %v1380_v63, %v1381_v5 }
 0x1b9   : > { %v1042_v41 = vrot.slane %v1041_v15, 1  ;;  %v1266_v36 = vrot.slane %v1265_v28, 1  ;;  %v1146_v44 = vrot.slane %v1145_v29, 1  ;;  %v1370_v54 = vrot.slane %v1369_v23, 1 }
 0x1ba   : > { %v1055_v27 = vrot.slane %v1054_v39, 1  ;;  %v1279_v26 = vrot.slane %v1278_v16, 1  ;;  %v1159_v19 = vrot.slane %v1158_v34, 1  ;;  %v1383_v48 = vrot.slane %v1382_v40, 1 }
 0x1bb   : > { %v1043_v46 = vadd.f32 %v1042_v41, %v1041_v15  ;;  %v1267_v37 = vmax.f32 %v1265_v28, %v1266_v36  ;;  %v1147_v47 = vadd.f32 %v1146_v44, %v1145_v29  ;;  %v1371_v31 = vmax.f32 %v1369_v23, %v1370_v54 }
 0x1bc   : > { %v1056_v56 = vadd.f32 %v1055_v27, %v1054_v39  ;;  %v1280_v51 = vmax.f32 %v1278_v16, %v1279_v26  ;;  %v1160_v3 = vadd.f32 %v1159_v19, %v1158_v34  ;;  %v1384_v6 = vmax.f32 %v1382_v40, %v1383_v48  ;;  %v790_v58 = vpop.f32.mrb[52].mxu0  ;;  %v950_v59 = vpop.f32.mrb[52].mxu1 }
 0x1bd   : > { %v1191_v61 = vmul.f32 0.015625, %v1043_v46  ;;  %v1199_v63 = vmul.f32 0.015625, %v1147_v47  ;;  %v1057_v7 = vadd.f32 %v784_v21, %v2851_v0  ;;  %v1281_v8 = vmax.f32 %v2851_v0, %v784_v21  ;;  %v792_v12 = vpop.f32.mrb[53].mxu0  ;;  %v952_v13 = vpop.f32.mrb[53].mxu1 }
 0x1be   : > { %v1192_v14 = vmul.f32 0.015625, %v1056_v56  ;;  %v1200_v5 = vmul.f32 0.015625, %v1160_v3  ;;  %v1070_v15 = vadd.f32 %v786_v30, %v2855_v9  ;;  %v1294_v54 = vmax.f32 %v2855_v9, %v786_v30  ;;  %v794_v27 = vpop.f32.mrb[54].mxu0  ;;  %v954_v26 = vpop.f32.mrb[54].mxu1 }
 0x1bf   : > { %v1417_v19 = vadd.f32 %v1267_v37, %v1191_v61  ;;  %v1425_v48 = vadd.f32 %v1371_v31, %v1199_v63  ;;  %v1161_v28 = vadd.f32 %v944_v22, %v2853_v1  ;;  %v1385_v46 = vmax.f32 %v2853_v1, %v944_v22  ;;  %v796_v29 = vpop.f32.mrb[55].mxu0  ;;  %v956_v23 = vpop.f32.mrb[55].mxu1 }
 0x1c0   : > { %v1418_v39 = vadd.f32 %v1280_v51, %v1192_v14  ;;  %v1426_v0 = vadd.f32 %v1384_v6, %v1200_v5  ;;  %v1174_v21 = vadd.f32 %v946_v33, %v2857_v11  ;;  %v1398_v16 = vmax.f32 %v2857_v11, %v946_v33 }
 0x1c1   : > { %v2869_v9 = vadd.f32 %v2705_v50, %v1417_v19  ;;  %v1058_v30 = vadd.f32 %v1057_v7, %v790_v58  ;;  %v1282_v37 = vmax.f32 %v1281_v8, %v790_v58  ;;  %v2873_v40 = vadd.f32 %v2758_v49, %v2845_v18 }
 0x1c2   : > { %v2876_v1 = vadd.f32 %v2709_v53, %v1418_v39  ;;  %v1162_v22 = vadd.f32 %v1161_v28, %v950_v59  ;;  %v1386_v41 = vmax.f32 %v1385_v46, %v950_v59  ;;  %v2880_v36 = vmul.f32 %v2849_v55, %v2849_v55 }
 0x1c3   : > { %3256 = vst [vmem:[#allocation24_spill] sm:$0xff] %v2869_v9  ;;  %v1071_v11 = vadd.f32 %v1070_v15, %v792_v12  ;;  %v1295_v33 = vmax.f32 %v1294_v54, %v792_v12  ;;  %v2884_v44 = vmul.f32 %v2828_v20, %v2828_v20  ;;  %v2887_v47 = vadd.f32 %v2705_v50, %v1425_v48 }
 0x1c4   : > { %3257 = vst [vmem:[#allocation25_spill] sm:$0xff] %v2876_v1  ;;  %v1175_v18 = vadd.f32 %v1174_v21, %v952_v13  ;;  %v1399_v31 = vmax.f32 %v1398_v16, %v952_v13  ;;  %v800_v56 = vpop.f32.mrb[56].mxu0  ;;  %v960_v51 = vpop.f32.mrb[56].mxu1  ;;  %v2891_v3 = vmul.f32 %v2831_v52, %v2831_v52  ;;  %v1620_v6 = vmul.f32 %v2737_v43, %v2869_v9 }
 0x1c5   : > { %v1059_v58 = vadd.f32 %v1058_v30, %v794_v27  ;;  %v1283_v59 = vmax.f32 %v1282_v37, %v794_v27  ;;  %v1163_v61 = vadd.f32 %v1162_v22, %v954_v26  ;;  %v802_v63 = vpop.f32.mrb[57].mxu0  ;;  %v962_v7 = vpop.f32.mrb[57].mxu1  ;;  %v1621_v8 = vmul.f32 %v2750_v38, %v2876_v1 }
 0x1c6   : > { %v1387_v12 = vmax.f32 %v1386_v41, %v954_v26  ;;  %v1072_v14 = vadd.f32 %v1071_v11, %v796_v29  ;;  %v1296_v13 = vmax.f32 %v1295_v33, %v796_v29  ;;  %v804_v5 = vpop.f32.mrb[58].mxu0  ;;  %v964_v15 = vpop.f32.mrb[58].mxu1  ;;  %v1176_v54 = vadd.f32 %v1175_v18, %v956_v23 }
 0x1c7   : > { %v1400_v19 = vmax.f32 %v1399_v31, %v956_v23  ;;  %v1060_v48 = vadd.f32 %v1059_v58, %v800_v56  ;;  %v1284_v28 = vmax.f32 %v1283_v59, %v800_v56  ;;  %v806_v46 = vpop.f32.mrb[59].mxu0  ;;  %v966_v39 = vpop.f32.mrb[59].mxu1  ;;  %v1164_v21 = vadd.f32 %v1163_v61, %v960_v51 }
 0x1c8   : > { %v1388_v16 = vmax.f32 %v1387_v12, %v960_v51  ;;  %v1073_v27 = vadd.f32 %v1072_v14, %v802_v63  ;;  %v1297_v30 = vmax.f32 %v1296_v13, %v802_v63  ;;  %v1177_v37 = vadd.f32 %v1176_v54, %v962_v7 }
 0x1c9   : > { %v1401_v22 = vmax.f32 %v1400_v19, %v962_v7  ;;  %v1061_v34 = vadd.f32 %v1060_v48, %v804_v5  ;;  %v1285_v55 = vmax.f32 %v1284_v28, %v804_v5  ;;  %v1165_v42 = vadd.f32 %v1164_v21, %v964_v15 }
 0x1ca   : > { %v1389_v26 = vmax.f32 %v1388_v16, %v964_v15  ;;  %v1074_v41 = vadd.f32 %v1073_v27, %v806_v46  ;;  %v1298_v29 = vmax.f32 %v1297_v30, %v806_v46  ;;  %v2899_v11 = vmul.f32 %v2869_v9, %v2869_v9 }
 0x1cb   : > { %v2902_v23 = vadd.f32 %v2709_v53, %v1426_v0  ;;  %v1178_v33 = vadd.f32 %v1177_v37, %v966_v39  ;;  %v1402_v18 = vmax.f32 %v1401_v22, %v966_v39  ;;  %v2905_v31 = vadd.f32 %v2742_v45, %v1620_v6 }
 0x1cc   : > { %v2909_v56 = vmul.f32 %v2876_v1, %v2876_v1  ;;  %v2912_v51 = vadd.f32 %v2758_v49, %v1621_v8  ;;  %v810_v58 = vpop.f32.mrb[60].mxu0  ;;  %v970_v59 = vpop.f32.mrb[60].mxu1  ;;  %v2916_v61 = vmul.f32 %v2887_v47, %v2887_v47 }
 0x1cd   : > { %v1062_v0 = vadd.f32 %v1061_v34, %v810_v58  ;;  %v1286_v63 = vmax.f32 %v1285_v55, %v810_v58  ;;  %v1166_v7 = vadd.f32 %v1165_v42, %v970_v59  ;;  %v1390_v12 = vmax.f32 %v1389_v26, %v970_v59  ;;  %v812_v14 = vpop.f32.mrb[61].mxu0  ;;  %v972_v6 = vpop.f32.mrb[61].mxu1 }
 0x1ce   : > { %v1075_v13 = vadd.f32 %v1074_v41, %v812_v14  ;;  %v1299_v5 = vmax.f32 %v1298_v29, %v812_v14  ;;  %v1179_v15 = vadd.f32 %v1178_v33, %v972_v6  ;;  %v1403_v54 = vmax.f32 %v1402_v18, %v972_v6  ;;  %v814_v19 = vpop.f32.mrb[62].mxu0  ;;  %v974_v48 = vpop.f32.mrb[62].mxu1 }
 0x1cf   : > { %v1063_v8 = vadd.f32 %v1062_v0, %v814_v19  ;;  %v1287_v28 = vmax.f32 %v1286_v63, %v814_v19  ;;  %v1167_v46 = vadd.f32 %v1166_v7, %v974_v48  ;;  %v1391_v39 = vmax.f32 %v1390_v12, %v974_v48  ;;  %v816_v21 = vpop.f32.mrb[63].mxu0  ;;  %v976_v16 = vpop.f32.mrb[63].mxu1 }
 0x1d0   : > { %v1076_v27 = vadd.f32 %v1075_v13, %v816_v21  ;;  %v1300_v30 = vmax.f32 %v1299_v5, %v816_v21  ;;  %v1180_v34 = vadd.f32 %v1179_v15, %v976_v16  ;;  %v1404_v55 = vmax.f32 %v1403_v54, %v976_v16 }
 0x1d1   : > { %v1064_v42 = vrot.slane %v1063_v8, 4  ;;  %v1288_v37 = vrot.slane %v1287_v28, 4  ;;  %v1168_v22 = vrot.slane %v1167_v46, 4  ;;  %v1392_v26 = vrot.slane %v1391_v39, 4 }
 0x1d2   : > { %v1077_v41 = vrot.slane %v1076_v27, 4  ;;  %v1301_v29 = vrot.slane %v1300_v30, 4  ;;  %v1181_v33 = vrot.slane %v1180_v34, 4  ;;  %v1405_v18 = vrot.slane %v1404_v55, 4 }
 0x1d3   : > { %v1065_v58 = vadd.f32 %v1064_v42, %v1063_v8  ;;  %v1289_v59 = vmax.f32 %v1287_v28, %v1288_v37  ;;  %v1169_v0 = vadd.f32 %v1168_v22, %v1167_v46  ;;  %v1393_v63 = vmax.f32 %v1391_v39, %v1392_v26 }
 0x1d4   : > { %v1078_v7 = vadd.f32 %v1077_v41, %v1076_v27  ;;  %v1302_v12 = vmax.f32 %v1300_v30, %v1301_v29  ;;  %v1182_v14 = vadd.f32 %v1181_v33, %v1180_v34  ;;  %v1406_v6 = vmax.f32 %v1404_v55, %v1405_v18 }
 0x1d5   : > { %v1066_v13 = vrot.slane %v1065_v58, 2  ;;  %v1290_v5 = vrot.slane %v1289_v59, 2  ;;  %v1170_v15 = vrot.slane %v1169_v0, 2  ;;  %v1394_v54 = vrot.slane %v1393_v63, 2 }
 0x1d6   : > { %v1079_v19 = vrot.slane %v1078_v7, 2  ;;  %v1303_v48 = vrot.slane %v1302_v12, 2  ;;  %v1183_v21 = vrot.slane %v1182_v14, 2  ;;  %v1407_v16 = vrot.slane %v1406_v6, 2 }
 0x1d7   : > { %v1067_v1 = vadd.f32 %v1066_v13, %v1065_v58  ;;  %v1291_v9 = vmax.f32 %v1289_v59, %v1290_v5  ;;  %v1171_v35 = vadd.f32 %v1170_v15, %v1169_v0  ;;  %v1395_v8 = vmax.f32 %v1393_v63, %v1394_v54 }
 0x1d8   : > { %v1080_v28 = vadd.f32 %v1079_v19, %v1078_v7  ;;  %v1304_v46 = vmax.f32 %v1302_v12, %v1303_v48  ;;  %v1184_v39 = vadd.f32 %v1183_v21, %v1182_v14  ;;  %v1408_v27 = vmax.f32 %v1406_v6, %v1407_v16 }
 0x1d9   : > { %v1068_v30 = vrot.slane %v1067_v1, 1  ;;  %v1292_v34 = vrot.slane %v1291_v9, 1  ;;  %v1172_v55 = vrot.slane %v1171_v35, 1  ;;  %v1396_v42 = vrot.slane %v1395_v8, 1 }
 0x1da   : > { %v1081_v37 = vrot.slane %v1080_v28, 1  ;;  %v1305_v22 = vrot.slane %v1304_v46, 1  ;;  %v1185_v26 = vrot.slane %v1184_v39, 1  ;;  %v1409_v41 = vrot.slane %v1408_v27, 1 }
 0x1db   : > { %v1069_v29 = vadd.f32 %v1068_v30, %v1067_v1  ;;  %v1173_v33 = vadd.f32 %v1172_v55, %v1171_v35  ;;  %v2920_v18 = vmul.f32 %v2902_v23, %v2902_v23  ;;  %v3258_v58 = vrot.slane %v2835_v4, 7 }
 0x1dc   : > { %v1293_v0 = vmax.f32 %v1291_v9, %v1292_v34  ;;  %v1082_v63 = vadd.f32 %v1081_v37, %v1080_v28  ;;  %v1186_v7 = vadd.f32 %v1185_v26, %v1184_v39  ;;  %v1490_v12 = vrot.slane %v2899_v11, 6 }
 0x1dd   : > { %v1489_v59 = vsel %vm1488_vm1, %v3258_v58, %v2765_v57  ;;  %v1193_v14 = vmul.f32 0.015625, %v1069_v29  ;;  %v1201_v6 = vmul.f32 0.015625, %v1173_v33  ;;  %v1397_v13 = vmax.f32 %v1395_v8, %v1396_v42 }
 0x1de   : > { %v1306_v1 = vmax.f32 %v1304_v46, %v1305_v22  ;;  %v1194_v35 = vmul.f32 0.015625, %v1082_v63  ;;  %v1202_v5 = vmul.f32 0.015625, %v1186_v7  ;;  %v1410_v15 = vmax.f32 %v1408_v27, %v1409_v41 }
 0x1df   : > { %v1510_v54 = vrot.slane %v2909_v56, 6  ;;  %v1419_v4 = vadd.f32 %v1293_v0, %v1193_v14  ;;  %v1427_v19 = vadd.f32 %v1397_v13, %v1201_v6  ;;  %v1496_v57 = vrot.slane %v2821_v62, 4 }
 0x1e0   : > { %v1499_v9 = vrot.slane %v2884_v44, 3  ;;  %v1420_v11 = vadd.f32 %v1306_v1, %v1194_v35  ;;  %v1428_v48 = vadd.f32 %v1410_v15, %v1202_v5  ;;  %v1492_v21 = vsel %vm1491_vm2, %v1490_v12, %v1489_v59 }
 0x1e1   : > { %v1502_v16 = vrot.slane %v2916_v61, 2  ;;  %v2933_v8 = vadd.f32 %v2705_v50, %v1419_v4  ;;  %v2936_v28 = vadd.f32 %v2705_v50, %v1427_v19  ;;  %v3259_v56 = vrot.slane %v2841_v10, 7 }
 0x1e2   : > { %v1514_v44 = vrot.slane %v2825_v60, 4  ;;  %v2944_v46 = vadd.f32 %v2709_v53, %v1420_v11  ;;  %v2947_v39 = vadd.f32 %v2709_v53, %v1428_v48  ;;  %v1516_v27 = vrot.slane %v2891_v3, 3 }
 0x1e3   : > { %v1509_v62 = vsel %vm1488_vm1, %v3259_v56, %v2799_v32  ;;  %v1622_v50 = vmul.f32 %v2737_v43, %v2933_v8  ;;  %v1461_v10 = vmul.f32 %v2933_v8, %v2933_v8  ;;  %v1469_v32 = vmul.f32 %v2936_v28, %v2936_v28 }
 0x1e4   : > { %v1511_v61 = vsel %vm1491_vm2, %v1510_v54, %v1509_v62  ;;  %v1518_v60 = vrot.slane %v2920_v18, 2  ;;  %v1623_v30 = vmul.f32 %v2750_v38, %v2944_v46  ;;  %v1462_v53 = vmul.f32 %v2944_v46, %v2944_v46 }
 0x1e5   : > { %v1470_v3 = vmul.f32 %v2947_v39, %v2947_v39  ;;  %v1626_v34 = vmul.f32 %v2737_v43, %v2828_v20  ;;  %v1493_v55 = vrot.slane %v1461_v10, 5  ;;  %v1627_v42 = vmul.f32 %v2750_v38, %v2831_v52 }
 0x1e6   : > { %v1628_v37 = vmul.f32 %v2737_v43, %v2887_v47  ;;  %v1629_v22 = vmul.f32 %v2750_v38, %v2902_v23  ;;  %v2973_v26 = vadd.f32 %v2742_v45, %v1622_v50  ;;  %v1512_v41 = vrot.slane %v1462_v53, 5 }
 0x1e7   : > { %v1630_v29 = vmul.f32 %v2737_v43, %v2936_v28  ;;  %v1631_v33 = vmul.f32 %v2750_v38, %v2947_v39  ;;  %v2980_v18 = vadd.f32 %v2758_v49, %v1623_v30  ;;  %v1495_v58 = vsel %vm1494_vm3, %v1493_v55, %v1492_v21 }
 0x1e8   : > { %v1505_v59 = vrot.slane %v1469_v32, 1  ;;  %v2985_v0 = vadd.f32 %v2742_v45, %v2771_v2  ;;  %v1498_v63 = vsel %vm1497_vm4, %v1496_v57, %v1495_v58  ;;  %v1513_v7 = vsel %vm1494_vm3, %v1512_v41, %v1511_v61 }
 0x1e9   : > { %v1520_v12 = vrot.slane %v1470_v3, 1  ;;  %v2991_v43 = vadd.f32 %v2758_v49, %v2803_v24  ;;  %v1501_v38 = vsel %vm1500_vm5, %v1499_v9, %v1498_v63  ;;  %v1515_v14 = vsel %vm1497_vm4, %v1514_v44, %v1513_v7 }
 0x1ea   : > { %v2996_v6 = vadd.f32 %v2742_v45, %v1626_v34  ;;  %v2999_v13 = vadd.f32 %v2758_v49, %v1627_v42  ;;  %v1504_v2 = vsel %vm1503_vm6, %v1502_v16, %v1501_v38  ;;  %v1517_v1 = vsel %vm1500_vm5, %v1516_v27, %v1515_v14 }
 0x1eb   : > { %v1660_v35 = vmul.f32 %v2905_v31, %v2905_v31  ;;  %v1662_v24 = vmul.f32 %v2973_v26, %v2973_v26  ;;  %v1507_v5 = vsel %vm1506_vm7, %v1505_v59, %v1504_v2  ;;  %v1519_v15 = vsel %vm1503_vm6, %v1518_v60, %v1517_v1 }
 0x1ec   : > { %v3010_v54 = vadd.f32 %v2742_v45, %v1628_v37  ;;  %v3013_v4 = vadd.f32 %v2742_v45, %v1630_v29  ;;  %v1659_v19 = vmul.f32 %v2873_v40, %v2873_v40  ;;  %v1521_v57 = vsel %vm1506_vm7, %v1520_v12, %v1519_v15 }
 0x1ed   : > { %v1661_v9 = vmul.f32 %v2912_v51, %v2912_v51  ;;  %v1663_v11 = vmul.f32 %v2980_v18, %v2980_v18  ;;  %v1524_v48 = vadd.f32 %v1521_v57, %v1507_v5  ;;  %v3023_v21 = vadd.f32 %v2758_v49, %v1629_v22 }
 0x1ee   : > { %v3026_v16 = vadd.f32 %v2758_v49, %v1631_v33  ;;  %v1664_v45 = vmul.f32 %v2985_v0, %v2985_v0  ;;  %v1666_v56 = vmul.f32 %v2996_v6, %v2996_v6  ;;  %v1688_v62 = vrot.slane %v2880_v36, 7 }
 0x1ef   : > { %v1690_v44 = vrot.slane %v1660_v35, 6  ;;  %v1692_v61 = vrot.slane %v1662_v24, 5  ;;  %1525 = vadd.xlane.f32.xlu0 %v1524_v48  ;;  %v1665_v27 = vmul.f32 %v2991_v43, %v2991_v43  ;;  %v1667_v50 = vmul.f32 %v2999_v13, %v2999_v13 }
 0x1f0   : > { %v1668_v49 = vmul.f32 %v3010_v54, %v3010_v54  ;;  %v1670_v10 = vmul.f32 %v3013_v4, %v3013_v4  ;;  %v1689_v32 = vsel %vm1488_vm1, %v1688_v62, %v2807_v17  ;;  %v1702_v60 = vrot.slane %v1659_v19, 7 }
 0x1f1   : > { %v1704_v36 = vrot.slane %v1661_v9, 6  ;;  %v1706_v30 = vrot.slane %v1663_v11, 5  ;;  %v1669_v53 = vmul.f32 %v3023_v21, %v3023_v21  ;;  %v1691_v3 = vsel %vm1491_vm2, %v1690_v44, %v1689_v32 }
 0x1f2   : > { %v1694_v34 = vrot.slane %v1664_v45, 4  ;;  %v1671_v55 = vmul.f32 %v3026_v16, %v3026_v16  ;;  %v1693_v42 = vsel %vm1494_vm3, %v1692_v61, %v1691_v3  ;;  %v1696_v37 = vrot.slane %v1666_v56, 3  ;;  %v3260_v61 = vld [vmem:[#allocation21_spill] sm:$0xff] }
 0x1f3   : > { %v1703_v22 = vsel %vm1488_vm1, %v1702_v60, %v2814_v25  ;;  %v1698_v41 = vrot.slane %v1668_v49, 2  ;;  %v1708_v33 = vrot.slane %v1665_v27, 4  ;;  %v1700_v59 = vrot.slane %v1670_v10, 1  ;;  %v3262_v10 = vld [vmem:[#allocation24_spill] sm:$0xff] }
 0x1f4   : > { %v1695_v17 = vsel %vm1497_vm4, %v1694_v34, %v1693_v42  ;;  %v1705_v29 = vsel %vm1491_vm2, %v1704_v36, %v1703_v22  ;;  %v1710_v7 = vrot.slane %v1667_v50, 3  ;;  %v1712_v14 = vrot.slane %v1669_v53, 2  ;;  %v3261_v50 = vld [vmem:[#allocation22_spill] sm:$0xff]  ;;  %v3263_v36 = vld [vmem:[#allocation15_spill] sm:$0xff]  ;;  %v3264_v53 = vld [vmem:[#allocation25_spill] sm:$0xff] }
 0x1f5   : > { %v1697_v58 = vsel %vm1500_vm5, %v1696_v37, %v1695_v17  ;;  %v1707_v63 = vsel %vm1494_vm3, %v1706_v30, %v1705_v29  ;;  %v1714_v1 = vrot.slane %v1671_v55, 1  ;;  %v3265_v34 = vld [vmem:[#allocation16_spill] sm:$0xff]  ;;  %v3266_v37 = vld [vmem:[#allocation17_spill] sm:$0xff] }
 0x1f6   : > { %v1699_v12 = vsel %vm1503_vm6, %v1698_v41, %v1697_v58  ;;  %v1709_v38 = vsel %vm1497_vm4, %v1708_v33, %v1707_v63  ;;  %v3267_v41 = vld [vmem:[#allocation18_spill] sm:$0xff] }
 0x1f7   : > { %v1701_v2 = vsel %vm1506_vm7, %v1700_v59, %v1699_v12  ;;  %v1711_v25 = vsel %vm1500_vm5, %v1710_v7, %v1709_v38 }
 0x1f8   : > { %v1713_v35 = vsel %vm1503_vm6, %v1712_v14, %v1711_v25 }
 0x1f9   : > { %v1715_v24 = vsel %vm1506_vm7, %v1714_v1, %v1713_v35 }
 0x1fa   : > { %v1718_v5 = vadd.f32 %v1715_v24, %v1701_v2 }
 0x1fc   : > { %1719 = vadd.xlane.f32.xlu0 %v1718_v5 }
 0x27c   : > { %v1526_v15 = vpop.xlane.xlu0 %1525 }
 0x27d   : > { %2185 = vrsqrt.f32 %v1526_v15 }
 0x287   : > { %v2186_v19 = vpop.eup %2185 }
 0x288   : > { %v1529_v9 = vrot.slane %v2186_v19, 1  ;;  %v1530_v11 = vrot.slane %v2186_v19, 2  ;;  %v1531_v48 = vrot.slane %v2186_v19, 3  ;;  %v1532_v45 = vrot.slane %v2186_v19, 4 }
 0x289   : > { %v1720_v57 = vpop.xlane.xlu0 %1719  ;;  %v1533_v56 = vrot.slane %v2186_v19, 5  ;;  %v1534_v62 = vrot.slane %v2186_v19, 6  ;;  %v1535_v44 = vrot.slane %v2186_v19, 7  ;;  %v1544_v30 = vmul.f32 %v2186_v19, %v3263_v36 }
 0x28a   : > { %2187 = vrsqrt.f32 %v1720_v57  ;;  %v1546_v27 = vmul.f32 %v1529_v9, %v3260_v61  ;;  %v1547_v49 = vmul.f32 %v1529_v9, %v3261_v50  ;;  %v1548_v32 = vmul.f32 %v1530_v11, %v3262_v10 }
 0x28b   : > { %v1550_v60 = vmul.f32 %v1531_v48, %v2933_v8  ;;  %v1549_v3 = vmul.f32 %v1530_v11, %v3264_v53  ;;  %v1552_v55 = vmul.f32 %v1532_v45, %v3265_v34  ;;  %v1554_v42 = vmul.f32 %v1533_v56, %v2828_v20  ;;  %v3268_v53 = vld [vmem:[#allocation23_spill] sm:$0xff] }
 0x28c   : > { %v1545_v22 = vmul.f32 %v2186_v19, %v3266_v37  ;;  %v1551_v17 = vmul.f32 %v1531_v48, %v2944_v46  ;;  %v1553_v29 = vmul.f32 %v1532_v45, %v3267_v41  ;;  %v1556_v33 = vmul.f32 %v1534_v62, %v2887_v47 }
 0x28d   : > { %v1555_v58 = vmul.f32 %v1533_v56, %v2831_v52  ;;  %v1558_v8 = vmul.f32 %v1535_v44, %v2936_v28  ;;  %v1576_v59 = vrot.slane %v1546_v27, 7  ;;  %v1578_v63 = vrot.slane %v1548_v32, 6 }
 0x28e   : > { %v1557_v7 = vmul.f32 %v1534_v62, %v2902_v23  ;;  %v1559_v12 = vmul.f32 %v1535_v44, %v2947_v39  ;;  %v1580_v20 = vrot.slane %v1550_v60, 5  ;;  %v1590_v38 = vrot.slane %v1547_v49, 7 }
 0x28f   : > { %v1577_v14 = vsel %vm1488_vm1, %v1576_v59, %v1544_v30  ;;  %v1582_v46 = vrot.slane %v1552_v55, 4  ;;  %v1584_v2 = vrot.slane %v1554_v42, 3  ;;  %v1592_v47 = vrot.slane %v1549_v3, 6 }
 0x290   : > { %v1579_v52 = vsel %vm1491_vm2, %v1578_v63, %v1577_v14  ;;  %v1586_v25 = vrot.slane %v1556_v33, 2  ;;  %v1591_v28 = vsel %vm1488_vm1, %v1590_v38, %v1545_v22  ;;  %v1594_v1 = vrot.slane %v1551_v17, 5 }
 0x291   : > { %v1581_v35 = vsel %vm1494_vm3, %v1580_v20, %v1579_v52  ;;  %v1588_v23 = vrot.slane %v1558_v8, 1  ;;  %v1593_v39 = vsel %vm1491_vm2, %v1592_v47, %v1591_v28  ;;  %v1596_v24 = vrot.slane %v1553_v29, 4 }
 0x292   : > { %v1583_v15 = vsel %vm1497_vm4, %v1582_v46, %v1581_v35  ;;  %v1595_v19 = vsel %vm1494_vm3, %v1594_v1, %v1593_v39  ;;  %v1598_v57 = vrot.slane %v1555_v58, 3  ;;  %v1600_v9 = vrot.slane %v1557_v7, 2 }
 0x293   : > { %v1585_v11 = vsel %vm1500_vm5, %v1584_v2, %v1583_v15  ;;  %v1597_v48 = vsel %vm1497_vm4, %v1596_v24, %v1595_v19  ;;  %v1602_v61 = vrot.slane %v1559_v12, 1 }
 0x294   : > { %v3083_v5 = vpop.eup %2187  ;;  %v1587_v62 = vsel %vm1503_vm6, %v1586_v25, %v1585_v11  ;;  %v1599_v44 = vsel %vm1500_vm5, %v1598_v57, %v1597_v48 }
 0x295   : > { %v1723_v45 = vrot.slane %v3083_v5, 1  ;;  %v1724_v56 = vrot.slane %v3083_v5, 2  ;;  %v1725_v27 = vrot.slane %v3083_v5, 3  ;;  %v1589_v50 = vsel %vm1506_vm7, %v1588_v23, %v1587_v62 }
 0x296   : > { %v1601_v49 = vsel %vm1503_vm6, %v1600_v9, %v1599_v44  ;;  %v1726_v10 = vrot.slane %v3083_v5, 4  ;;  %1606 = vst [vmem:[%s247_s27] sm:$0xff] %v1589_v50  ;;  %v1727_v60 = vrot.slane %v3083_v5, 5  ;;  %v1728_v36 = vrot.slane %v3083_v5, 6 }
 0x297   : > { %v1603_v32 = vsel %vm1506_vm7, %v1602_v61, %v1601_v49  ;;  %v1729_v30 = vrot.slane %v3083_v5, 7  ;;  %v1740_v3 = vmul.f32 %v1723_v45, %v3268_v53  ;;  %v1742_v34 = vmul.f32 %v1724_v56, %v2905_v31 }
 0x298   : > { %1607 = vst [vmem:[%s247_s27 + $0x8] sm:$0xff] %v1603_v32 }
 0x299   : > { %2288 = shalt.err (!%p2285_p2)
}
 0x29a   : > { %s2289_s25 = scalar_lea.hbm %s3104_s14, 256  ;;  %s2293_s10 = scalar_lea.hbm %s3221_s3, 512 }
 0x29b   : > { %p2290_p13 = scmp.ne.s32.totalorder %s3104_s14, %s2289_s25  ;;  %p2294_p4 = scmp.lt.u32.totalorder %s3104_s14, %s3221_s3 }
 0x29c   : > { %p2295_p5 = scmp.lt.u32.totalorder %s2293_s10, %s2289_s25  ;;  %p2297_p11 = scmp.lt.u32.totalorder %s2289_s25, %s3104_s14 }
 0x29d   : > { %p2291_p6 = pnand %p2290_p13, %p3269_p0 }
 0x29e   : > { %p2296_p8 = por %p2295_p5, %p2294_p4 }
 0x29f   : > { %p2292_p10 = pneg %p2291_p6 }
 0x2a0   : > { %p2298_p1 = por %p2297_p11, %p2296_p8 }
 0x2a2   : > { %p2299_p3 = pnand %p2298_p1, %p2292_p10 }
 0x2a4   : > { %2302 = shalt.err (!%p2299_p3)
}
 0x2a5   : > { %2074 = dma.vmem_to_hbm [thread:$0]  (%p3269_p0), %s3106_s30, 256, %s3104_s14, %s1803_s13   ;;  %v1741_v31 = vmul.f32 %v1723_v45, %v2873_v40  ;;  %v1743_v55 = vmul.f32 %v1724_v56, %v2912_v51  ;;  %v1744_v42 = vmul.f32 %v1725_v27, %v2973_v26  ;;  %v3270_v37 = vld [vmem:[#allocation19_spill] sm:$0xff]  ;;  %v3271_v17 = vld [vmem:[#allocation20_spill] sm:$0xff]  ;;  %v1746_v29 = vmul.f32 %v1726_v10, %v2985_v0 }
 0x2a6   : > { %v1738_v22 = vmul.f32 %v3083_v5, %v3270_v37  ;;  %v1739_v41 = vmul.f32 %v3083_v5, %v3271_v17  ;;  %v1745_v33 = vmul.f32 %v1725_v27, %v2980_v18  ;;  %v1748_v58 = vmul.f32 %v1727_v60, %v2996_v6  ;;  %s254_s30 = scalar_lea.vmem [#allocation9], %s1970_s21  ;;  %s3173_s21 = scalar_lea.hbm %s3222_s4, %s2054_s23 }
 0x2a7   : > { %v1770_v8 = vrot.slane %v1740_v3, 7  ;;  %v1772_v59 = vrot.slane %v1742_v34, 6  ;;  %v1747_v40 = vmul.f32 %v1726_v10, %v2991_v43  ;;  %v1749_v51 = vmul.f32 %v1727_v60, %v2999_v13  ;;  %s1836_s6 = sshll.u32 %s254_s30, 4  ;;  %s1808_s28 = scalar_lea.sflag [#allocation10], %s2586_s7  ;;  %s3175_s6 = int_to_ptr.vmem [resolvable:$true] %s1836_s6 }
 0x2a8   : > { %v1750_v26 = vmul.f32 %v1728_v36, %v3010_v54  ;;  %v1752_v63 = vmul.f32 %v1729_v30, %v3013_v4  ;;  %v1774_v12 = vrot.slane %v1744_v42, 5  ;;  %v1784_v20 = vrot.slane %v1741_v31, 7  ;;  %s2303_s20 = scalar_lea.vmem %s3175_s6, 256  ;;  %s2388_s19 = smov [#allocation9]  }
 0x2a9   : > { %v1771_v7 = vsel %vm1488_vm1, %v1770_v8, %v1738_v22  ;;  %v1786_v38 = vrot.slane %v1743_v55, 6  ;;  %v1751_v0 = vmul.f32 %v1728_v36, %v3023_v21  ;;  %v1753_v18 = vmul.f32 %v1729_v30, %v3026_v16  ;;  %p2304_p7 = scmp.ne.s32.totalorder %s3175_s6, %s2303_s20  ;;  %s2307_s24 = sshll.u32 %s2388_s19, 4  ;;  %s2308_s24 = int_to_ptr.vmem [resolvable:$false] %s2307_s24 }
 0x2aa   : > { %v1773_v6 = vsel %vm1491_vm2, %v1772_v59, %v1771_v7  ;;  %v1776_v14 = vrot.slane %v1746_v29, 4  ;;  %v1778_v13 = vrot.slane %v1748_v58, 3  ;;  %v1785_v54 = vsel %vm1488_vm1, %v1784_v20, %v1739_v41  ;;  %s2309_s29 = scalar_lea.vmem %s2308_s24, 512  ;;  %p2310_p2 = scmp.lt.s32.totalorder %s3175_s6, %s2308_s24 }
 0x2ab   : > { %v1775_v43 = vsel %vm1494_vm3, %v1774_v12, %v1773_v6  ;;  %v1788_v46 = vrot.slane %v1745_v33, 5  ;;  %v1780_v2 = vrot.slane %v1750_v26, 2  ;;  %v1787_v47 = vsel %vm1491_vm2, %v1786_v38, %v1785_v54  ;;  %p2305_p9 = pnand %p2304_p7, %p3269_p0  ;;  %p2311_p13 = scmp.lt.s32.totalorder %s2309_s29, %s2303_s20 }
 0x2ac   : > { %v1777_v4 = vsel %vm1497_vm4, %v1776_v14, %v1775_v43  ;;  %v1790_v52 = vrot.slane %v1747_v40, 4  ;;  %v1782_v25 = vrot.slane %v1752_v63, 1  ;;  %v1792_v28 = vrot.slane %v1749_v51, 3 }
 0x2ad   : > { %v1779_v21 = vsel %vm1500_vm5, %v1778_v13, %v1777_v4  ;;  %v1789_v16 = vsel %vm1494_vm3, %v1788_v46, %v1787_v47  ;;  %v1794_v23 = vrot.slane %v1751_v0, 2  ;;  %v1796_v5 = vrot.slane %v1753_v18, 1  ;;  %p2306_p12 = pneg %p2305_p9  ;;  %p2312_p6 = por %p2311_p13, %p2310_p2 }
 0x2ae   : > { %v1781_v1 = vsel %vm1503_vm6, %v1780_v2, %v1779_v21  ;;  %v1791_v35 = vsel %vm1497_vm4, %v1790_v52, %v1789_v16 }
 0x2af   : > { %v1783_v39 = vsel %vm1506_vm7, %v1782_v25, %v1781_v1  ;;  %v1793_v24 = vsel %vm1500_vm5, %v1792_v28, %v1791_v35  ;;  %p2313_p10 = pnand %p2312_p6, %p2306_p12 }
 0x2b0   : > { %v1795_v15 = vsel %vm1503_vm6, %v1794_v23, %v1793_v24  ;;  %1800 = vst [vmem:[%s254_s30] sm:$0xff] %v1783_v39 }
 0x2b1   : > { %v1797_v19 = vsel %vm1506_vm7, %v1796_v5, %v1795_v15 }
 0x2b2   : > { %1801 = vst [vmem:[%s254_s30 + $0x8] sm:$0xff] %v1797_v19 }
 0x2b3   : > { %2316 = shalt.err (!%p2313_p10)
}
 0x2b4   : > { %s2317_s7 = scalar_lea.hbm %s3173_s21, 256  ;;  %s2321_s8 = scalar_lea.hbm %s3222_s4, 512 }
 0x2b5   : > { %p2318_p4 = scmp.ne.s32.totalorder %s3173_s21, %s2317_s7  ;;  %p2322_p11 = scmp.lt.u32.totalorder %s3173_s21, %s3222_s4 }
 0x2b6   : > { %p2323_p1 = scmp.lt.u32.totalorder %s2321_s8, %s2317_s7  ;;  %p2325_p7 = scmp.lt.u32.totalorder %s2317_s7, %s3173_s21 }
 0x2b7   : > { %p2319_p5 = pnand %p2318_p4, %p3269_p0 }
 0x2b8   : > { %p2324_p3 = por %p2323_p1, %p2322_p11 }
 0x2b9   : > { %p2320_p8 = pneg %p2319_p5 }
 0x2ba   : > { %p2326_p9 = por %p2325_p7, %p2324_p3 }
 0x2bc   : > { %p2327_p12 = pnand %p2326_p9, %p2320_p8 }
 0x2be   : > { %2330 = shalt.err (!%p2327_p12)
}
 0x2bf   : > { %2075 = dma.vmem_to_hbm [thread:$0]  (%p3269_p0), %s3175_s6, 256, %s3173_s21, %s1808_s28  }
 0x2c0 PF: > { %s1848_s27 = sand.u32 1, %s2365_s15   ;;  %p3272_p2 = scmp.ne.s32.totalorder %s3238_s22, 0 }
 0x2c1   : > { %p3273_p13 = scmp.ge.s32.totalorder %s2377_s18, 2  ;;  %s1849_s5 = scalar_lea.sflag [#allocation4], %s1848_s27 }
 0x2c3   : > { %p2090_p6 = pnand %p3273_p13, %p3272_p2 }
 0x2c5   : > { %2356 = dma.done.wait (!%p2090_p6), %s1849_s5, 256  }
 0x2c6   : > { %2358 = vsyncadd (!%p2090_p6), %s1849_s5, 4294967040  ;;  %s1858_s30 = scalar_lea.sflag [#allocation10], %s1848_s27 }
 0x2c7   : > { %2360 = dma.done.wait (!%p2090_p6), %s1858_s30, 256  }
 0x2c8   : > { %2362 = vsyncadd (!%p2090_p6), %s1858_s30, 4294967040  ;;  %p22_p0 = scmp.ge.s32.totalorder %s2524_s9, 4   ;;  %s3274_s15 = smov %s2369_s16 }
 0x2c9   : > { %s3275_s16 = smov %s2373_s17  ;;  %s3276_s17 = smov %s2540_s12 }
 0x2ca   : > { %s3277_s18 = smov %s2524_s9  ;;  %24 = sbr.rel (!%p22_p0) target bundleno = 8 (0x8), region = 102 }
 0x2d1   :  { %1863 = vsyncpa [#allocation3], 1 }
 0x2d2   :  { %1865 = vsyncpa [#allocation3 + $0x1], 1 }
 0x2d3   :  { %1866 = vsyncpa [#allocation6], 1 }
 0x2d4   :  { %1867 = vsyncpa [#allocation4], 1 }
 0x2d5   :  { %1869 = vsyncpa [#allocation4 + $0x1], 1 }
 0x2d6   :  { %1870 = vsyncpa [#allocation10], 1 }
 0x2d7   :  { %1872 = vsyncpa [#allocation10 + $0x1], 1 }

</bundles_post_ra>
